<compile_context>
chip_gen: v7x
topology: tpu7x:2x2x1
jax: 0.10.0
libtpu: 0.0.40
codegen_flags: <defaults>
</compile_context>

<pallas_src>
import jax
import jax.numpy as jnp
from jax import lax
from jax.experimental import pallas as pl
from jax.experimental.pallas import tpu as pltpu


def _round_up(x, m):
    return (x + m - 1) // m * m


# --------------------------------------------------------------------------
# Kernel A: tiled matmul + bias (out = x @ w + b), bf16 operands, f32 acc.
# Two variants: single-K-block (no reduction axis) and multi-K-block
# (accumulates directly into the resident f32 output -> no acc scratch).
# --------------------------------------------------------------------------
def _matmul_bias_kernel(x_ref, w_ref, b_ref, o_ref):
    o_ref[...] = (jnp.dot(x_ref[...], w_ref[...],
                          preferred_element_type=jnp.float32)
                  + b_ref[...]).astype(o_ref.dtype)


def _matmul_bias_acc_kernel(x_ref, w_ref, b_ref, o_ref):
    # o_ref (f32) keeps the same block index across the k axis -> resident
    # accumulator; init with the bias at k == 0, then accumulate in place.
    @pl.when(pl.program_id(2) == 0)
    def _():
        o_ref[...] = jnp.broadcast_to(b_ref[...], o_ref.shape)

    o_ref[...] += jnp.dot(x_ref[...], w_ref[...],
                          preferred_element_type=jnp.float32)


def pallas_matmul_bias(x, w, b, *, out_dtype=jnp.float32,
                       tm_max=256, tn_max=512, tk_max=512):
    """x: (M, K), w: (K, N), b: (N,) -> (M, N). Pads to tile multiples."""
    M, K = x.shape
    _, N = w.shape
    tm = min(_round_up(M, 8), tm_max)
    tn = min(_round_up(N, 128), tn_max)
    tk = min(_round_up(K, 128), tk_max)
    Mp, Kp, Np = _round_up(M, tm), _round_up(K, tk), _round_up(N, tn)

    x_p = jnp.pad(x, ((0, Mp - M), (0, Kp - K)))
    w_p = jnp.pad(w, ((0, Kp - K), (0, Np - N)))
    b_p = jnp.pad(b.reshape(1, N).astype(jnp.float32), ((0, 0), (0, Np - N)))

    nk = Kp // tk
    cparams = pltpu.CompilerParams(
        dimension_semantics=("parallel", "parallel") if nk == 1
        else ("parallel", "parallel", "arbitrary"),
        vmem_limit_bytes=32 * 1024 * 1024)

    if nk == 1:
        out = pl.pallas_call(
            _matmul_bias_kernel,
            out_shape=jax.ShapeDtypeStruct((Mp, Np), out_dtype),
            grid_spec=pltpu.PrefetchScalarGridSpec(
                num_scalar_prefetch=0,
                grid=(Mp // tm, Np // tn),
                in_specs=[
                    pl.BlockSpec((tm, Kp), lambda i, j: (i, 0)),
                    pl.BlockSpec((Kp, tn), lambda i, j: (0, j)),
                    pl.BlockSpec((1, tn), lambda i, j: (0, j)),
                ],
                out_specs=pl.BlockSpec((tm, tn), lambda i, j: (i, j)),
            ),
            compiler_params=cparams,
        )(x_p, w_p, b_p)
        return out[:M, :N]

    out = pl.pallas_call(
        _matmul_bias_acc_kernel,
        out_shape=jax.ShapeDtypeStruct((Mp, Np), jnp.float32),
        grid_spec=pltpu.PrefetchScalarGridSpec(
            num_scalar_prefetch=0,
            grid=(Mp // tm, Np // tn, nk),
            in_specs=[
                pl.BlockSpec((tm, tk), lambda i, j, k: (i, k)),
                pl.BlockSpec((tk, tn), lambda i, j, k: (k, j)),
                pl.BlockSpec((1, tn), lambda i, j, k: (0, j)),
            ],
            out_specs=pl.BlockSpec((tm, tn), lambda i, j, k: (i, j)),
        ),
        compiler_params=cparams,
    )(x_p, w_p, b_p)
    return out[:M, :N].astype(out_dtype)


# --------------------------------------------------------------------------
# Kernel B: the LSTM recurrence. Grid iterates over TIME CHUNKS; an unrolled
# fori_loop walks each chunk.  Only h @ W_hh + gate math stays serial; h/c
# live in f32 VMEM scratch across grid steps.  zx / h_seq / W_hh are bf16.
# --------------------------------------------------------------------------
def _lstm_recurrent_kernel(zx_ref, whh_ref, hseq_ref, h_ref, c_ref):
    # zx_ref   : (Tc, B, 4H) bf16  precomputed x @ W_ih^T + (b_ih + b_hh)
    # whh_ref  : (H, 4H)     bf16  W_hh^T (H padded to a multiple of 128)
    # hseq_ref : (Tc, B, H)  bf16  hidden states for this time chunk
    # h_ref/c_ref : (B, H)   f32   VMEM scratch carrying state across steps
    H = h_ref.shape[-1]

    @pl.when(pl.program_id(0) == 0)
    def _():
        h_ref[...] = jnp.zeros_like(h_ref)
        c_ref[...] = jnp.zeros_like(c_ref)

    t_chunk = zx_ref.shape[0]

    def fast_sigmoid(x):
        # exactly sigmoid(x), but one EUP push (tanh) instead of exp + recip
        return 0.5 * jnp.tanh(0.5 * x) + 0.5

    def step(t, carry):
        h = h_ref[...]
        c = c_ref[...]
        # Stream W_hh^T straight from its ref into the MXU (no value copy).
        z = (zx_ref[t].astype(jnp.float32)
             + jnp.dot(h.astype(jnp.bfloat16), whh_ref[...],
                       preferred_element_type=jnp.float32))
        # H is a multiple of 128 -> each gate slice is a whole lane tile.
        # PyTorch gate order [i, f, g, o].
        i_g = fast_sigmoid(z[:, 0 * H:1 * H])
        f_g = fast_sigmoid(z[:, 1 * H:2 * H])
        g_g = jnp.tanh(z[:, 2 * H:3 * H])
        o_g = fast_sigmoid(z[:, 3 * H:4 * H])
        c_new = f_g * c + i_g * g_g
        h_new = o_g * jnp.tanh(c_new)
        c_ref[...] = c_new
        h_ref[...] = h_new
        hseq_ref[t] = h_new.astype(hseq_ref.dtype)
        return carry

    # Fully unroll the short, static chunk loop for LLO scheduling visibility.
    lax.fori_loop(0, t_chunk, step, 0, unroll=True)


# --------------------------------------------------------------------------
# Wrapper: embedding gather + concat (layout glue, plain JAX), then the three
# Pallas stages: input precompute -> recurrence -> vocab projection.
# --------------------------------------------------------------------------
@jax.jit
def decoder_rnn_forward(features, captions, params):
    """features: (B, E) f32; captions: (B, T_cap) i32 -> logits (B, T_cap, V)."""
    embed_tbl = params["embed"].astype(jnp.float32)       # (V, E)
    cap = captions[:, :-1]                                # (B, T_cap - 1)
    cap_emb = jnp.take(embed_tbl, cap, axis=0)            # (B, T_cap - 1, E)
    x = jnp.concatenate([features[:, None, :].astype(jnp.float32), cap_emb],
                        axis=1)                           # (B, T, E)

    B, T, E = x.shape
    H = params["w_hh"].shape[1]
    V = params["w_fc"].shape[0]

    B_pad = _round_up(B, 8)       # sublane alignment
    H_pad = _round_up(H, 128)     # lane alignment -> tile-aligned gate slices
    t_chunk = min(T, 32)
    T_pad = _round_up(T, t_chunk)

    # ---- weight repacking / padding (per-gate H padding keeps gate stripes
    #      at 128-aligned offsets; padded weights/bias are zero => padded h/c
    #      lanes stay exactly 0 and never contaminate real lanes). ----
    w_ih = params["w_ih"].astype(jnp.float32)             # (4H, E)
    w_hh = params["w_hh"].astype(jnp.float32)             # (4H, H)
    bias = (params["b_ih"] + params["b_hh"]).astype(jnp.float32)  # (4H,)
    w_fc = params["w_fc"].astype(jnp.float32)             # (V, H)
    b_fc = params["b_fc"].astype(jnp.float32)             # (V,)

    w_ih_t = jnp.transpose(
        jnp.pad(w_ih.reshape(4, H, E),
                ((0, 0), (0, H_pad - H), (0, 0))).reshape(4 * H_pad, E)
    ).astype(jnp.bfloat16)                                # (E, 4H_pad)
    w_hh_t = jnp.transpose(
        jnp.pad(w_hh.reshape(4, H, H),
                ((0, 0), (0, H_pad - H), (0, H_pad - H))).reshape(4 * H_pad,
                                                                  H_pad)
    ).astype(jnp.bfloat16)                                # (H_pad, 4H_pad)
    bias_p = jnp.pad(bias.reshape(4, H),
                     ((0, 0), (0, H_pad - H))).reshape(4 * H_pad)
    w_fc_t = jnp.transpose(
        jnp.pad(w_fc, ((0, 0), (0, H_pad - H)))).astype(jnp.bfloat16)  # (Hp, V)

    # ---- batch/time pad + time-major, bf16 (padded timesteps trail the real
    #      ones and their outputs are sliced off) ----
    x_p = jnp.pad(x, ((0, B_pad - B), (0, T_pad - T), (0, 0)))
    x_tm = jnp.transpose(x_p, (1, 0, 2)).astype(jnp.bfloat16)  # (T_pad,B_pad,E)

    # ---- stage 1: hoisted input-gate matmul (parallel, M = T_pad*B_pad) ----
    zx = pallas_matmul_bias(x_tm.reshape(T_pad * B_pad, E), w_ih_t, bias_p,
                            out_dtype=jnp.bfloat16)
    zx = zx.reshape(T_pad, B_pad, 4 * H_pad)

    # ---- stage 2: serial recurrence, time folded into in-kernel loop ----
    h_seq = pl.pallas_call(
        _lstm_recurrent_kernel,
        out_shape=jax.ShapeDtypeStruct((T_pad, B_pad, H_pad), jnp.bfloat16),
        grid_spec=pltpu.PrefetchScalarGridSpec(
            num_scalar_prefetch=0,
            grid=(T_pad // t_chunk,),
            in_specs=[
                pl.BlockSpec((t_chunk, B_pad, 4 * H_pad),
                             lambda i: (i, 0, 0)),                   # zx chunk
                pl.BlockSpec((H_pad, 4 * H_pad), lambda i: (0, 0)),  # W_hh^T
            ],
            out_specs=pl.BlockSpec((t_chunk, B_pad, H_pad),
                                   lambda i: (i, 0, 0)),
            scratch_shapes=[
                pltpu.VMEM((B_pad, H_pad), jnp.float32),   # h state
                pltpu.VMEM((B_pad, H_pad), jnp.float32),   # c state
            ],
        ),
        compiler_params=pltpu.CompilerParams(
            # recurrence over time -> strictly sequential grid axis
            dimension_semantics=("arbitrary",),
            vmem_limit_bytes=32 * 1024 * 1024),
    )(zx, w_hh_t)

    # ---- stage 3: hoisted vocab projection on real-batch rows only.
    #      Transpose the H-wide h_seq (cheap) so logits land batch-major. ----
    h_bm = jnp.transpose(h_seq[:T], (1, 0, 2))[:B]        # (B, T, H_pad) bf16
    logits = pallas_matmul_bias(h_bm.reshape(B * T, H_pad), w_fc_t, b_fc,
                                out_dtype=jnp.float32)    # (B*T, V)
    return logits.reshape(B, T, V)


# --------------------------------------------------------------------------
# Pure-JAX reference (for correctness check).
# --------------------------------------------------------------------------
def reference_forward(features, captions, p):
    cap = captions[:, :-1]
    cap_emb = p["embed"][cap]
    x = jnp.concatenate([features[:, None, :], cap_emb], axis=1)
    B, T, E = x.shape
    H = p["w_hh"].shape[1]
    prec = lax.Precision.HIGHEST

    def step(carry, x_t):
        h, c = carry
        z = (jnp.dot(x_t, p["w_ih"].T, precision=prec)
             + jnp.dot(h, p["w_hh"].T, precision=prec)
             + p["b_ih"] + p["b_hh"])
        i_g, f_g, g_g, o_g = jnp.split(z, 4, axis=-1)
        i_g = jax.nn.sigmoid(i_g)
        f_g = jax.nn.sigmoid(f_g)
        g_g = jnp.tanh(g_g)
        o_g = jax.nn.sigmoid(o_g)
        c = f_g * c + i_g * g_g
        h = o_g * jnp.tanh(c)
        return (h, c), h

    init = (jnp.zeros((B, H), jnp.float32), jnp.zeros((B, H), jnp.float32))
    _, hs = lax.scan(step, init, jnp.transpose(x, (1, 0, 2)))
    hs = jnp.transpose(hs, (1, 0, 2))                      # (B, T, H)
    return jnp.dot(hs, p["w_fc"].T, precision=prec) + p["b_fc"]


# --------------------------------------------------------------------------
# Deterministic parameter init (shapes follow the PyTorch module).
# --------------------------------------------------------------------------
def init_params(key, embed_size, hidden_size, vocab_size):
    ks = jax.random.split(key, 7)
    s = 1.0 / jnp.sqrt(hidden_size)
    return {
        "embed": jax.random.normal(ks[0], (vocab_size, embed_size),
                                   jnp.float32) * 0.1,
        "w_ih": jax.random.uniform(ks[1], (4 * hidden_size, embed_size),
                                   jnp.float32, -s, s),
        "w_hh": jax.random.uniform(ks[2], (4 * hidden_size, hidden_size),
                                   jnp.float32, -s, s),
        "b_ih": jax.random.uniform(ks[3], (4 * hidden_size,), jnp.float32, -s, s),
        "b_hh": jax.random.uniform(ks[4], (4 * hidden_size,), jnp.float32, -s, s),
        "w_fc": jax.random.uniform(ks[5], (vocab_size, hidden_size),
                                   jnp.float32, -s, s),
        "b_fc": jax.random.uniform(ks[6], (vocab_size,), jnp.float32, -s, s),
    }


if __name__ == "__main__":
    # Small shapes consistent with the module's forward().
    B, E, H, V, T_CAP = 2, 32, 32, 128, 9   # LSTM sequence length == T_CAP

    key = jax.random.PRNGKey(0)
    k_feat, k_cap, k_par = jax.random.split(key, 3)

    features = jax.random.normal(k_feat, (B, E), jnp.float32)
    captions = jax.random.randint(k_cap, (B, T_CAP), 0, V, jnp.int32)
    params = init_params(k_par, E, H, V)

    out = decoder_rnn_forward(features, captions, params)
    out = jax.block_until_ready(out)
    assert out.shape == (B, T_CAP, V), out.shape

    ref = jax.block_until_ready(reference_forward(features, captions, params))
    assert jnp.allclose(out, ref, atol=5e-2, rtol=5e-2), (
        float(jnp.max(jnp.abs(out - ref))))

    # TODO(synk): sample() (greedy decode with data-dependent early stop) is a
    # host-driven loop in the original module and is not implemented here.
    print("KERNEL_OK")
</pallas_src>

<mosaic_0001>
module attributes {stable_mosaic.version = 11 : i64} {
  func.func @_matmul_bias_kernel(%arg0: i32, %arg1: i32, %arg2: memref<72x128xbf16, #tpu.memory_space<vmem>>, %arg3: memref<128x512xbf16, #tpu.memory_space<vmem>>, %arg4: memref<1x512xf32, #tpu.memory_space<vmem>>, %arg5: memref<72x512xbf16, #tpu.memory_space<vmem>>) attributes {dimension_semantics = [#tpu.dimension_semantics<parallel>, #tpu.dimension_semantics<parallel>], iteration_bounds = array<i64: 1, 1>, scalar_prefetch = 0 : i64, scratch_operands = 0 : i64, tpu.core_type = #tpu.core_type<tc>, window_params = [{transform_indices = @transform_0, window_bounds = array<i64: 72, 128>}, {transform_indices = @transform_1, window_bounds = array<i64: 128, 512>}, {transform_indices = @transform_2, window_bounds = array<i64: 1, 512>}, {transform_indices = @transform_3, window_bounds = array<i64: 72, 512>}]} {
    %c0 = arith.constant 0 : index
    %c0_0 = arith.constant 0 : index
    %0 = vector.load %arg2[%c0, %c0_0] : memref<72x128xbf16, #tpu.memory_space<vmem>>, vector<72x128xbf16>
    %c0_1 = arith.constant 0 : index
    %c0_2 = arith.constant 0 : index
    %1 = vector.load %arg3[%c0_1, %c0_2] : memref<128x512xbf16, #tpu.memory_space<vmem>>, vector<128x512xbf16>
    %cst = arith.constant dense<0.000000e+00> : vector<72x512xf32>
    %2 = tpu.matmul %0, %1, %cst {dimension_numbers = #tpu.dot_dimension_numbers<[1], [0], [0], [1], [0, 0, 1, 1], [], []>} : vector<72x128xbf16>, vector<128x512xbf16>, vector<72x512xf32> -> vector<72x512xf32>
    %c0_3 = arith.constant 0 : index
    %c0_4 = arith.constant 0 : index
    %3 = vector.load %arg4[%c0_3, %c0_4] : memref<1x512xf32, #tpu.memory_space<vmem>>, vector<1x512xf32>
    %4 = vector.broadcast %3 : vector<1x512xf32> to vector<72x512xf32>
    %5 = arith.addf %2, %4 : vector<72x512xf32>
    %6 = arith.truncf %5 : vector<72x512xf32> to vector<72x512xbf16>
    %c0_5 = arith.constant 0 : index
    %c0_6 = arith.constant 0 : index
    %7 = vector.load %arg5[%c0_5, %c0_6] : memref<72x512xbf16, #tpu.memory_space<vmem>>, vector<72x512xbf16>
    tpu.vector_store %arg5[%c0_5, %c0_6], %6 {strides = array<i32>} : memref<72x512xbf16, #tpu.memory_space<vmem>>, vector<72x512xbf16>,
    return
  }
  func.func @transform_0(%arg0: i32, %arg1: i32) -> (i32, i32) {
    %c0_i32 = arith.constant 0 : i32
    %c0_i32_0 = arith.constant 0 : i32
    return %arg0, %c0_i32 : i32, i32
  }
  func.func @transform_1(%arg0: i32, %arg1: i32) -> (i32, i32) {
    %c0_i32 = arith.constant 0 : i32
    %c0_i32_0 = arith.constant 0 : i32
    return %c0_i32, %arg1 : i32, i32
  }
  func.func @transform_2(%arg0: i32, %arg1: i32) -> (i32, i32) {
    %c0_i32 = arith.constant 0 : i32
    %c0_i32_0 = arith.constant 0 : i32
    return %c0_i32, %arg1 : i32, i32
  }
  func.func @transform_3(%arg0: i32, %arg1: i32) -> (i32, i32) {
    %c0_i32 = arith.constant 0 : i32
    return %arg0, %arg1 : i32, i32
  }
}

module attributes {stable_mosaic.version = 11 : i64} {
  func.func @_lstm_recurrent_kernel(%arg0: i32, %arg1: memref<9x8x512xbf16, #tpu.memory_space<vmem>>, %arg2: memref<128x512xbf16, #tpu.memory_space<vmem>>, %arg3: memref<9x8x128xbf16, #tpu.memory_space<vmem>>, %arg4: memref<8x128xf32, #tpu.memory_space<vmem>>, %arg5: memref<8x128xf32, #tpu.memory_space<vmem>>) attributes {dimension_semantics = [#tpu.dimension_semantics<arbitrary>], iteration_bounds = array<i64: 1>, scalar_prefetch = 0 : i64, scratch_operands = 2 : i64, tpu.core_type = #tpu.core_type<tc>, window_params = [{transform_indices = @transform_0, window_bounds = array<i64: 9, 8, 512>}, {pipeline_mode = #tpu.pipeline_mode<synchronous>, transform_indices = @transform_1, window_bounds = array<i64: 128, 512>}, {transform_indices = @transform_2, window_bounds = array<i64: 9, 8, 128>}]} {
    %c0_i32 = arith.constant 0 : i32
    %0 = arith.cmpi eq, %arg0, %c0_i32 : i32
    %1 = arith.extui %0 : i1 to i32
    %c0_i32_0 = arith.constant 0 : i32
    %2 = arith.cmpi ne, %1, %c0_i32_0 : i32
    scf.if %2 {
      %cst_216 = arith.constant 0.000000e+00 : f32
      %435 = vector.broadcast %cst_216 : f32 to vector<8x128xf32>
      %c0_217 = arith.constant 0 : index
      %c0_218 = arith.constant 0 : index
      %436 = vector.load %arg4[%c0_217, %c0_218] : memref<8x128xf32, #tpu.memory_space<vmem>>, vector<8x128xf32>
      tpu.vector_store %arg4[%c0_217, %c0_218], %435 {strides = array<i32>} : memref<8x128xf32, #tpu.memory_space<vmem>>, vector<8x128xf32>,
      %cst_219 = arith.constant 0.000000e+00 : f32
      %437 = vector.broadcast %cst_219 : f32 to vector<8x128xf32>
      %c0_220 = arith.constant 0 : index
      %c0_221 = arith.constant 0 : index
      %438 = vector.load %arg5[%c0_220, %c0_221] : memref<8x128xf32, #tpu.memory_space<vmem>>, vector<8x128xf32>
      tpu.vector_store %arg5[%c0_220, %c0_221], %437 {strides = array<i32>} : memref<8x128xf32, #tpu.memory_space<vmem>>, vector<8x128xf32>,
    } else {
    }
    %c0_i32_1 = arith.constant 0 : i32
    %c0 = arith.constant 0 : index
    %c0_2 = arith.constant 0 : index
    %3 = vector.load %arg4[%c0, %c0_2] : memref<8x128xf32, #tpu.memory_space<vmem>>, vector<8x128xf32>
    %c0_3 = arith.constant 0 : index
    %c0_4 = arith.constant 0 : index
    %4 = vector.load %arg5[%c0_3, %c0_4] : memref<8x128xf32, #tpu.memory_space<vmem>>, vector<8x128xf32>
    %5 = arith.index_cast %c0_i32_1 : i32 to index
    %c0_5 = arith.constant 0 : index
    %c0_6 = arith.constant 0 : index
    %6 = vector.load %arg1[%5, %c0_5, %c0_6] : memref<9x8x512xbf16, #tpu.memory_space<vmem>>, vector<1x8x512xbf16>
    %7 = vector.shape_cast %6 : vector<1x8x512xbf16> to vector<8x512xbf16>
    %8 = arith.extf %7 : vector<8x512xbf16> to vector<8x512xf32>
    %9 = arith.truncf %3 : vector<8x128xf32> to vector<8x128xbf16>
    %c0_7 = arith.constant 0 : index
    %c0_8 = arith.constant 0 : index
    %10 = vector.load %arg2[%c0_7, %c0_8] : memref<128x512xbf16, #tpu.memory_space<vmem>>, vector<128x512xbf16>
    %cst = arith.constant dense<0.000000e+00> : vector<8x512xf32>
    %11 = tpu.matmul %9, %10, %cst {dimension_numbers = #tpu.dot_dimension_numbers<[1], [0], [0], [1], [0, 0, 1, 1], [], []>} : vector<8x128xbf16>, vector<128x512xbf16>, vector<8x512xf32> -> vector<8x512xf32>
    %12 = arith.addf %8, %11 : vector<8x512xf32>
    %13 = vector.extract_strided_slice %12 {offsets = [0, 0], sizes = [8, 128], strides = [1, 1]} : vector<8x512xf32> to vector<8x128xf32>
    %cst_9 = arith.constant 5.000000e-01 : f32
    %14 = vector.broadcast %cst_9 : f32 to vector<8x128xf32>
    %15 = arith.mulf %14, %13 : vector<8x128xf32>
    %16 = math.tanh %15 : vector<8x128xf32>
    %cst_10 = arith.constant 5.000000e-01 : f32
    %17 = vector.broadcast %cst_10 : f32 to vector<8x128xf32>
    %18 = arith.mulf %17, %16 : vector<8x128xf32>
    %cst_11 = arith.constant 5.000000e-01 : f32
    %19 = vector.broadcast %cst_11 : f32 to vector<8x128xf32>
    %20 = arith.addf %18, %19 : vector<8x128xf32>
    %21 = vector.extract_strided_slice %12 {offsets = [0, 128], sizes = [8, 128], strides = [1, 1]} : vector<8x512xf32> to vector<8x128xf32>
    %cst_12 = arith.constant 5.000000e-01 : f32
    %22 = vector.broadcast %cst_12 : f32 to vector<8x128xf32>
    %23 = arith.mulf %22, %21 : vector<8x128xf32>
    %24 = math.tanh %23 : vector<8x128xf32>
    %cst_13 = arith.constant 5.000000e-01 : f32
    %25 = vector.broadcast %cst_13 : f32 to vector<8x128xf32>
    %26 = arith.mulf %25, %24 : vector<8x128xf32>
    %cst_14 = arith.constant 5.000000e-01 : f32
    %27 = vector.broadcast %cst_14 : f32 to vector<8x128xf32>
    %28 = arith.addf %26, %27 : vector<8x128xf32>
    %29 = vector.extract_strided_slice %12 {offsets = [0, 256], sizes = [8, 128], strides = [1, 1]} : vector<8x512xf32> to vector<8x128xf32>
    %30 = math.tanh %29 : vector<8x128xf32>
    %31 = vector.extract_strided_slice %12 {offsets = [0, 384], sizes = [8, 128], strides = [1, 1]} : vector<8x512xf32> to vector<8x128xf32>
    %cst_15 = arith.constant 5.000000e-01 : f32
    %32 = vector.broadcast %cst_15 : f32 to vector<8x128xf32>
    %33 = arith.mulf %32, %31 : vector<8x128xf32>
    %34 = math.tanh %33 : vector<8x128xf32>
    %cst_16 = arith.constant 5.000000e-01 : f32
    %35 = vector.broadcast %cst_16 : f32 to vector<8x128xf32>
    %36 = arith.mulf %35, %34 : vector<8x128xf32>
    %cst_17 = arith.constant 5.000000e-01 : f32
    %37 = vector.broadcast %cst_17 : f32 to vector<8x128xf32>
    %38 = arith.addf %36, %37 : vector<8x128xf32>
    %39 = arith.mulf %28, %4 : vector<8x128xf32>
    %40 = arith.mulf %20, %30 : vector<8x128xf32>
    %41 = arith.addf %39, %40 : vector<8x128xf32>
    %42 = math.tanh %41 : vector<8x128xf32>
    %43 = arith.mulf %38, %42 : vector<8x128xf32>
    %c0_18 = arith.constant 0 : index
    %c0_19 = arith.constant 0 : index
    %44 = vector.load %arg5[%c0_18, %c0_19] : memref<8x128xf32, #tpu.memory_space<vmem>>, vector<8x128xf32>
    tpu.vector_store %arg5[%c0_18, %c0_19], %41 {strides = array<i32>} : memref<8x128xf32, #tpu.memory_space<vmem>>, vector<8x128xf32>,
    %c0_20 = arith.constant 0 : index
    %c0_21 = arith.constant 0 : index
    %45 = vector.load %arg4[%c0_20, %c0_21] : memref<8x128xf32, #tpu.memory_space<vmem>>, vector<8x128xf32>
    tpu.vector_store %arg4[%c0_20, %c0_21], %43 {strides = array<i32>} : memref<8x128xf32, #tpu.memory_space<vmem>>, vector<8x128xf32>,
    %46 = arith.truncf %43 : vector<8x128xf32> to vector<8x128xbf16>
    %47 = arith.index_cast %c0_i32_1 : i32 to index
    %c0_22 = arith.constant 0 : index
    %c0_23 = arith.constant 0 : index
    %48 = vector.load %arg3[%47, %c0_22, %c0_23] : memref<9x8x128xbf16, #tpu.memory_space<vmem>>, vector<1x8x128xbf16>
    %49 = vector.shape_cast %48 : vector<1x8x128xbf16> to vector<8x128xbf16>
    %50 = vector.shape_cast %46 : vector<8x128xbf16> to vector<1x8x128xbf16>
    tpu.vector_store %arg3[%47, %c0_22, %c0_23], %50 {strides = array<i32>} : memref<9x8x128xbf16, #tpu.memory_space<vmem>>, vector<1x8x128xbf16>,
    %c1_i32 = arith.constant 1 : i32
    %c0_24 = arith.constant 0 : index
    %c0_25 = arith.constant 0 : index
    %51 = vector.load %arg4[%c0_24, %c0_25] : memref<8x128xf32, #tpu.memory_space<vmem>>, vector<8x128xf32>
    %c0_26 = arith.constant 0 : index
    %c0_27 = arith.constant 0 : index
    %52 = vector.load %arg5[%c0_26, %c0_27] : memref<8x128xf32, #tpu.memory_space<vmem>>, vector<8x128xf32>
    %53 = arith.index_cast %c1_i32 : i32 to index
    %c0_28 = arith.constant 0 : index
    %c0_29 = arith.constant 0 : index
    %54 = vector.load %arg1[%53, %c0_28, %c0_29] : memref<9x8x512xbf16, #tpu.memory_space<vmem>>, vector<1x8x512xbf16>
    %55 = vector.shape_cast %54 : vector<1x8x512xbf16> to vector<8x512xbf16>
    %56 = arith.extf %55 : vector<8x512xbf16> to vector<8x512xf32>
    %57 = arith.truncf %51 : vector<8x128xf32> to vector<8x128xbf16>
    %c0_30 = arith.constant 0 : index
    %c0_31 = arith.constant 0 : index
    %58 = vector.load %arg2[%c0_30, %c0_31] : memref<128x512xbf16, #tpu.memory_space<vmem>>, vector<128x512xbf16>
    %cst_32 = arith.constant dense<0.000000e+00> : vector<8x512xf32>
    %59 = tpu.matmul %57, %58, %cst_32 {dimension_numbers = #tpu.dot_dimension_numbers<[1], [0], [0], [1], [0, 0, 1, 1], [], []>} : vector<8x128xbf16>, vector<128x512xbf16>, vector<8x512xf32> -> vector<8x512xf32>
    %60 = arith.addf %56, %59 : vector<8x512xf32>
    %61 = vector.extract_strided_slice %60 {offsets = [0, 0], sizes = [8, 128], strides = [1, 1]} : vector<8x512xf32> to vector<8x128xf32>
    %cst_33 = arith.constant 5.000000e-01 : f32
    %62 = vector.broadcast %cst_33 : f32 to vector<8x128xf32>
    %63 = arith.mulf %62, %61 : vector<8x128xf32>
    %64 = math.tanh %63 : vector<8x128xf32>
    %cst_34 = arith.constant 5.000000e-01 : f32
    %65 = vector.broadcast %cst_34 : f32 to vector<8x128xf32>
    %66 = arith.mulf %65, %64 : vector<8x128xf32>
    %cst_35 = arith.constant 5.000000e-01 : f32
    %67 = vector.broadcast %cst_35 : f32 to vector<8x128xf32>
    %68 = arith.addf %66, %67 : vector<8x128xf32>
    %69 = vector.extract_strided_slice %60 {offsets = [0, 128], sizes = [8, 128], strides = [1, 1]} : vector<8x512xf32> to vector<8x128xf32>
    %cst_36 = arith.constant 5.000000e-01 : f32
    %70 = vector.broadcast %cst_36 : f32 to vector<8x128xf32>
    %71 = arith.mulf %70, %69 : vector<8x128xf32>
    %72 = math.tanh %71 : vector<8x128xf32>
    %cst_37 = arith.constant 5.000000e-01 : f32
    %73 = vector.broadcast %cst_37 : f32 to vector<8x128xf32>
    %74 = arith.mulf %73, %72 : vector<8x128xf32>
    %cst_38 = arith.constant 5.000000e-01 : f32
    %75 = vector.broadcast %cst_38 : f32 to vector<8x128xf32>
    %76 = arith.addf %74, %75 : vector<8x128xf32>
    %77 = vector.extract_strided_slice %60 {offsets = [0, 256], sizes = [8, 128], strides = [1, 1]} : vector<8x512xf32> to vector<8x128xf32>
    %78 = math.tanh %77 : vector<8x128xf32>
    %79 = vector.extract_strided_slice %60 {offsets = [0, 384], sizes = [8, 128], strides = [1, 1]} : vector<8x512xf32> to vector<8x128xf32>
    %cst_39 = arith.constant 5.000000e-01 : f32
    %80 = vector.broadcast %cst_39 : f32 to vector<8x128xf32>
    %81 = arith.mulf %80, %79 : vector<8x128xf32>
    %82 = math.tanh %81 : vector<8x128xf32>
    %cst_40 = arith.constant 5.000000e-01 : f32
    %83 = vector.broadcast %cst_40 : f32 to vector<8x128xf32>
    %84 = arith.mulf %83, %82 : vector<8x128xf32>
    %cst_41 = arith.constant 5.000000e-01 : f32
    %85 = vector.broadcast %cst_41 : f32 to vector<8x128xf32>
    %86 = arith.addf %84, %85 : vector<8x128xf32>
    %87 = arith.mulf %76, %52 : vector<8x128xf32>
    %88 = arith.mulf %68, %78 : vector<8x128xf32>
    %89 = arith.addf %87, %88 : vector<8x128xf32>
    %90 = math.tanh %89 : vector<8x128xf32>
    %91 = arith.mulf %86, %90 : vector<8x128xf32>
    %c0_42 = arith.constant 0 : index
    %c0_43 = arith.constant 0 : index
    %92 = vector.load %arg5[%c0_42, %c0_43] : memref<8x128xf32, #tpu.memory_space<vmem>>, vector<8x128xf32>
    tpu.vector_store %arg5[%c0_42, %c0_43], %89 {strides = array<i32>} : memref<8x128xf32, #tpu.memory_space<vmem>>, vector<8x128xf32>,
    %c0_44 = arith.constant 0 : index
    %c0_45 = arith.constant 0 : index
    %93 = vector.load %arg4[%c0_44, %c0_45] : memref<8x128xf32, #tpu.memory_space<vmem>>, vector<8x128xf32>
    tpu.vector_store %arg4[%c0_44, %c0_45], %91 {strides = array<i32>} : memref<8x128xf32, #tpu.memory_space<vmem>>, vector<8x128xf32>,
    %94 = arith.truncf %91 : vector<8x128xf32> to vector<8x128xbf16>
    %95 = arith.index_cast %c1_i32 : i32 to index
    %c0_46 = arith.constant 0 : index
    %c0_47 = arith.constant 0 : index
    %96 = vector.load %arg3[%95, %c0_46, %c0_47] : memref<9x8x128xbf16, #tpu.memory_space<vmem>>, vector<1x8x128xbf16>
    %97 = vector.shape_cast %96 : vector<1x8x128xbf16> to vector<8x128xbf16>
    %98 = vector.shape_cast %94 : vector<8x128xbf16> to vector<1x8x128xbf16>
    tpu.vector_store %arg3[%95, %c0_46, %c0_47], %98 {strides = array<i32>} : memref<9x8x128xbf16, #tpu.memory_space<vmem>>, vector<1x8x128xbf16>,
    %c2_i32 = arith.constant 2 : i32
    %c0_48 = arith.constant 0 : index
    %c0_49 = arith.constant 0 : index
    %99 = vector.load %arg4[%c0_48, %c0_49] : memref<8x128xf32, #tpu.memory_space<vmem>>, vector<8x128xf32>
    %c0_50 = arith.constant 0 : index
    %c0_51 = arith.constant 0 : index
    %100 = vector.load %arg5[%c0_50, %c0_51] : memref<8x128xf32, #tpu.memory_space<vmem>>, vector<8x128xf32>
    %101 = arith.index_cast %c2_i32 : i32 to index
    %c0_52 = arith.constant 0 : index
    %c0_53 = arith.constant 0 : index
    %102 = vector.load %arg1[%101, %c0_52, %c0_53] : memref<9x8x512xbf16, #tpu.memory_space<vmem>>, vector<1x8x512xbf16>
    %103 = vector.shape_cast %102 : vector<1x8x512xbf16> to vector<8x512xbf16>
    %104 = arith.extf %103 : vector<8x512xbf16> to vector<8x512xf32>
    %105 = arith.truncf %99 : vector<8x128xf32> to vector<8x128xbf16>
    %c0_54 = arith.constant 0 : index
    %c0_55 = arith.constant 0 : index
    %106 = vector.load %arg2[%c0_54, %c0_55] : memref<128x512xbf16, #tpu.memory_space<vmem>>, vector<128x512xbf16>
    %cst_56 = arith.constant dense<0.000000e+00> : vector<8x512xf32>
    %107 = tpu.matmul %105, %106, %cst_56 {dimension_numbers = #tpu.dot_dimension_numbers<[1], [0], [0], [1], [0, 0, 1, 1], [], []>} : vector<8x128xbf16>, vector<128x512xbf16>, vector<8x512xf32> -> vector<8x512xf32>
    %108 = arith.addf %104, %107 : vector<8x512xf32>
    %109 = vector.extract_strided_slice %108 {offsets = [0, 0], sizes = [8, 128], strides = [1, 1]} : vector<8x512xf32> to vector<8x128xf32>
    %cst_57 = arith.constant 5.000000e-01 : f32
    %110 = vector.broadcast %cst_57 : f32 to vector<8x128xf32>
    %111 = arith.mulf %110, %109 : vector<8x128xf32>
    %112 = math.tanh %111 : vector<8x128xf32>
    %cst_58 = arith.constant 5.000000e-01 : f32
    %113 = vector.broadcast %cst_58 : f32 to vector<8x128xf32>
    %114 = arith.mulf %113, %112 : vector<8x128xf32>
    %cst_59 = arith.constant 5.000000e-01 : f32
    %115 = vector.broadcast %cst_59 : f32 to vector<8x128xf32>
    %116 = arith.addf %114, %115 : vector<8x128xf32>
    %117 = vector.extract_strided_slice %108 {offsets = [0, 128], sizes = [8, 128], strides = [1, 1]} : vector<8x512xf32> to vector<8x128xf32>
    %cst_60 = arith.constant 5.000000e-01 : f32
    %118 = vector.broadcast %cst_60 : f32 to vector<8x128xf32>
    %119 = arith.mulf %118, %117 : vector<8x128xf32>
    %120 = math.tanh %119 : vector<8x128xf32>
    %cst_61 = arith.constant 5.000000e-01 : f32
    %121 = vector.broadcast %cst_61 : f32 to vector<8x128xf32>
    %122 = arith.mulf %121, %120 : vector<8x128xf32>
    %cst_62 = arith.constant 5.000000e-01 : f32
    %123 = vector.broadcast %cst_62 : f32 to vector<8x128xf32>
    %124 = arith.addf %122, %123 : vector<8x128xf32>
    %125 = vector.extract_strided_slice %108 {offsets = [0, 256], sizes = [8, 128], strides = [1, 1]} : vector<8x512xf32> to vector<8x128xf32>
    %126 = math.tanh %125 : vector<8x128xf32>
    %127 = vector.extract_strided_slice %108 {offsets = [0, 384], sizes = [8, 128], strides = [1, 1]} : vector<8x512xf32> to vector<8x128xf32>
    %cst_63 = arith.constant 5.000000e-01 : f32
    %128 = vector.broadcast %cst_63 : f32 to vector<8x128xf32>
    %129 = arith.mulf %128, %127 : vector<8x128xf32>
    %130 = math.tanh %129 : vector<8x128xf32>
    %cst_64 = arith.constant 5.000000e-01 : f32
    %131 = vector.broadcast %cst_64 : f32 to vector<8x128xf32>
    %132 = arith.mulf %131, %130 : vector<8x128xf32>
    %cst_65 = arith.constant 5.000000e-01 : f32
    %133 = vector.broadcast %cst_65 : f32 to vector<8x128xf32>
    %134 = arith.addf %132, %133 : vector<8x128xf32>
    %135 = arith.mulf %124, %100 : vector<8x128xf32>
    %136 = arith.mulf %116, %126 : vector<8x128xf32>
    %137 = arith.addf %135, %136 : vector<8x128xf32>
    %138 = math.tanh %137 : vector<8x128xf32>
    %139 = arith.mulf %134, %138 : vector<8x128xf32>
    %c0_66 = arith.constant 0 : index
    %c0_67 = arith.constant 0 : index
    %140 = vector.load %arg5[%c0_66, %c0_67] : memref<8x128xf32, #tpu.memory_space<vmem>>, vector<8x128xf32>
    tpu.vector_store %arg5[%c0_66, %c0_67], %137 {strides = array<i32>} : memref<8x128xf32, #tpu.memory_space<vmem>>, vector<8x128xf32>,
    %c0_68 = arith.constant 0 : index
    %c0_69 = arith.constant 0 : index
    %141 = vector.load %arg4[%c0_68, %c0_69] : memref<8x128xf32, #tpu.memory_space<vmem>>, vector<8x128xf32>
    tpu.vector_store %arg4[%c0_68, %c0_69], %139 {strides = array<i32>} : memref<8x128xf32, #tpu.memory_space<vmem>>, vector<8x128xf32>,
    %142 = arith.truncf %139 : vector<8x128xf32> to vector<8x128xbf16>
    %143 = arith.index_cast %c2_i32 : i32 to index
    %c0_70 = arith.constant 0 : index
    %c0_71 = arith.constant 0 : index
    %144 = vector.load %arg3[%143, %c0_70, %c0_71] : memref<9x8x128xbf16, #tpu.memory_space<vmem>>, vector<1x8x128xbf16>
    %145 = vector.shape_cast %144 : vector<1x8x128xbf16> to vector<8x128xbf16>
    %146 = vector.shape_cast %142 : vector<8x128xbf16> to vector<1x8x128xbf16>
    tpu.vector_store %arg3[%143, %c0_70, %c0_71], %146 {strides = array<i32>} : memref<9x8x128xbf16, #tpu.memory_space<vmem>>, vector<1x8x128xbf16>,
    %c3_i32 = arith.constant 3 : i32
    %c0_72 = arith.constant 0 : index
    %c0_73 = arith.constant 0 : index
    %147 = vector.load %arg4[%c0_72, %c0_73] : memref<8x128xf32, #tpu.memory_space<vmem>>, vector<8x128xf32>
    %c0_74 = arith.constant 0 : index
    %c0_75 = arith.constant 0 : index
    %148 = vector.load %arg5[%c0_74, %c0_75] : memref<8x128xf32, #tpu.memory_space<vmem>>, vector<8x128xf32>
    %149 = arith.index_cast %c3_i32 : i32 to index
    %c0_76 = arith.constant 0 : index
    %c0_77 = arith.constant 0 : index
    %150 = vector.load %arg1[%149, %c0_76, %c0_77] : memref<9x8x512xbf16, #tpu.memory_space<vmem>>, vector<1x8x512xbf16>
    %151 = vector.shape_cast %150 : vector<1x8x512xbf16> to vector<8x512xbf16>
    %152 = arith.extf %151 : vector<8x512xbf16> to vector<8x512xf32>
    %153 = arith.truncf %147 : vector<8x128xf32> to vector<8x128xbf16>
    %c0_78 = arith.constant 0 : index
    %c0_79 = arith.constant 0 : index
    %154 = vector.load %arg2[%c0_78, %c0_79] : memref<128x512xbf16, #tpu.memory_space<vmem>>, vector<128x512xbf16>
    %cst_80 = arith.constant dense<0.000000e+00> : vector<8x512xf32>
    %155 = tpu.matmul %153, %154, %cst_80 {dimension_numbers = #tpu.dot_dimension_numbers<[1], [0], [0], [1], [0, 0, 1, 1], [], []>} : vector<8x128xbf16>, vector<128x512xbf16>, vector<8x512xf32> -> vector<8x512xf32>
    %156 = arith.addf %152, %155 : vector<8x512xf32>
    %157 = vector.extract_strided_slice %156 {offsets = [0, 0], sizes = [8, 128], strides = [1, 1]} : vector<8x512xf32> to vector<8x128xf32>
    %cst_81 = arith.constant 5.000000e-01 : f32
    %158 = vector.broadcast %cst_81 : f32 to vector<8x128xf32>
    %159 = arith.mulf %158, %157 : vector<8x128xf32>
    %160 = math.tanh %159 : vector<8x128xf32>
    %cst_82 = arith.constant 5.000000e-01 : f32
    %161 = vector.broadcast %cst_82 : f32 to vector<8x128xf32>
    %162 = arith.mulf %161, %160 : vector<8x128xf32>
    %cst_83 = arith.constant 5.000000e-01 : f32
    %163 = vector.broadcast %cst_83 : f32 to vector<8x128xf32>
    %164 = arith.addf %162, %163 : vector<8x128xf32>
    %165 = vector.extract_strided_slice %156 {offsets = [0, 128], sizes = [8, 128], strides = [1, 1]} : vector<8x512xf32> to vector<8x128xf32>
    %cst_84 = arith.constant 5.000000e-01 : f32
    %166 = vector.broadcast %cst_84 : f32 to vector<8x128xf32>
    %167 = arith.mulf %166, %165 : vector<8x128xf32>
    %168 = math.tanh %167 : vector<8x128xf32>
    %cst_85 = arith.constant 5.000000e-01 : f32
    %169 = vector.broadcast %cst_85 : f32 to vector<8x128xf32>
    %170 = arith.mulf %169, %168 : vector<8x128xf32>
    %cst_86 = arith.constant 5.000000e-01 : f32
    %171 = vector.broadcast %cst_86 : f32 to vector<8x128xf32>
    %172 = arith.addf %170, %171 : vector<8x128xf32>
    %173 = vector.extract_strided_slice %156 {offsets = [0, 256], sizes = [8, 128], strides = [1, 1]} : vector<8x512xf32> to vector<8x128xf32>
    %174 = math.tanh %173 : vector<8x128xf32>
    %175 = vector.extract_strided_slice %156 {offsets = [0, 384], sizes = [8, 128], strides = [1, 1]} : vector<8x512xf32> to vector<8x128xf32>
    %cst_87 = arith.constant 5.000000e-01 : f32
    %176 = vector.broadcast %cst_87 : f32 to vector<8x128xf32>
    %177 = arith.mulf %176, %175 : vector<8x128xf32>
    %178 = math.tanh %177 : vector<8x128xf32>
    %cst_88 = arith.constant 5.000000e-01 : f32
    %179 = vector.broadcast %cst_88 : f32 to vector<8x128xf32>
    %180 = arith.mulf %179, %178 : vector<8x128xf32>
    %cst_89 = arith.constant 5.000000e-01 : f32
    %181 = vector.broadcast %cst_89 : f32 to vector<8x128xf32>
    %182 = arith.addf %180, %181 : vector<8x128xf32>
    %183 = arith.mulf %172, %148 : vector<8x128xf32>
    %184 = arith.mulf %164, %174 : vector<8x128xf32>
    %185 = arith.addf %183, %184 : vector<8x128xf32>
    %186 = math.tanh %185 : vector<8x128xf32>
    %187 = arith.mulf %182, %186 : vector<8x128xf32>
    %c0_90 = arith.constant 0 : index
    %c0_91 = arith.constant 0 : index
    %188 = vector.load %arg5[%c0_90, %c0_91] : memref<8x128xf32, #tpu.memory_space<vmem>>, vector<8x128xf32>
    tpu.vector_store %arg5[%c0_90, %c0_91], %185 {strides = array<i32>} : memref<8x128xf32, #tpu.memory_space<vmem>>, vector<8x128xf32>,
    %c0_92 = arith.constant 0 : index
    %c0_93 = arith.constant 0 : index
    %189 = vector.load %arg4[%c0_92, %c0_93] : memref<8x128xf32, #tpu.memory_space<vmem>>, vector<8x128xf32>
    tpu.vector_store %arg4[%c0_92, %c0_93], %187 {strides = array<i32>} : memref<8x128xf32, #tpu.memory_space<vmem>>, vector<8x128xf32>,
    %190 = arith.truncf %187 : vector<8x128xf32> to vector<8x128xbf16>
    %191 = arith.index_cast %c3_i32 : i32 to index
    %c0_94 = arith.constant 0 : index
    %c0_95 = arith.constant 0 : index
    %192 = vector.load %arg3[%191, %c0_94, %c0_95] : memref<9x8x128xbf16, #tpu.memory_space<vmem>>, vector<1x8x128xbf16>
    %193 = vector.shape_cast %192 : vector<1x8x128xbf16> to vector<8x128xbf16>
    %194 = vector.shape_cast %190 : vector<8x128xbf16> to vector<1x8x128xbf16>
    tpu.vector_store %arg3[%191, %c0_94, %c0_95], %194 {strides = array<i32>} : memref<9x8x128xbf16, #tpu.memory_space<vmem>>, vector<1x8x128xbf16>,
    %c4_i32 = arith.constant 4 : i32
    %c0_96 = arith.constant 0 : index
    %c0_97 = arith.constant 0 : index
    %195 = vector.load %arg4[%c0_96, %c0_97] : memref<8x128xf32, #tpu.memory_space<vmem>>, vector<8x128xf32>
    %c0_98 = arith.constant 0 : index
    %c0_99 = arith.constant 0 : index
    %196 = vector.load %arg5[%c0_98, %c0_99] : memref<8x128xf32, #tpu.memory_space<vmem>>, vector<8x128xf32>
    %197 = arith.index_cast %c4_i32 : i32 to index
    %c0_100 = arith.constant 0 : index
    %c0_101 = arith.constant 0 : index
    %198 = vector.load %arg1[%197, %c0_100, %c0_101] : memref<9x8x512xbf16, #tpu.memory_space<vmem>>, vector<1x8x512xbf16>
    %199 = vector.shape_cast %198 : vector<1x8x512xbf16> to vector<8x512xbf16>
    %200 = arith.extf %199 : vector<8x512xbf16> to vector<8x512xf32>
    %201 = arith.truncf %195 : vector<8x128xf32> to vector<8x128xbf16>
    %c0_102 = arith.constant 0 : index
    %c0_103 = arith.constant 0 : index
    %202 = vector.load %arg2[%c0_102, %c0_103] : memref<128x512xbf16, #tpu.memory_space<vmem>>, vector<128x512xbf16>
    %cst_104 = arith.constant dense<0.000000e+00> : vector<8x512xf32>
    %203 = tpu.matmul %201, %202, %cst_104 {dimension_numbers = #tpu.dot_dimension_numbers<[1], [0], [0], [1], [0, 0, 1, 1], [], []>} : vector<8x128xbf16>, vector<128x512xbf16>, vector<8x512xf32> -> vector<8x512xf32>
    %204 = arith.addf %200, %203 : vector<8x512xf32>
    %205 = vector.extract_strided_slice %204 {offsets = [0, 0], sizes = [8, 128], strides = [1, 1]} : vector<8x512xf32> to vector<8x128xf32>
    %cst_105 = arith.constant 5.000000e-01 : f32
    %206 = vector.broadcast %cst_105 : f32 to vector<8x128xf32>
    %207 = arith.mulf %206, %205 : vector<8x128xf32>
    %208 = math.tanh %207 : vector<8x128xf32>
    %cst_106 = arith.constant 5.000000e-01 : f32
    %209 = vector.broadcast %cst_106 : f32 to vector<8x128xf32>
    %210 = arith.mulf %209, %208 : vector<8x128xf32>
    %cst_107 = arith.constant 5.000000e-01 : f32
    %211 = vector.broadcast %cst_107 : f32 to vector<8x128xf32>
    %212 = arith.addf %210, %211 : vector<8x128xf32>
    %213 = vector.extract_strided_slice %204 {offsets = [0, 128], sizes = [8, 128], strides = [1, 1]} : vector<8x512xf32> to vector<8x128xf32>
    %cst_108 = arith.constant 5.000000e-01 : f32
    %214 = vector.broadcast %cst_108 : f32 to vector<8x128xf32>
    %215 = arith.mulf %214, %213 : vector<8x128xf32>
    %216 = math.tanh %215 : vector<8x128xf32>
    %cst_109 = arith.constant 5.000000e-01 : f32
    %217 = vector.broadcast %cst_109 : f32 to vector<8x128xf32>
    %218 = arith.mulf %217, %216 : vector<8x128xf32>
    %cst_110 = arith.constant 5.000000e-01 : f32
    %219 = vector.broadcast %cst_110 : f32 to vector<8x128xf32>
    %220 = arith.addf %218, %219 : vector<8x128xf32>
    %221 = vector.extract_strided_slice %204 {offsets = [0, 256], sizes = [8, 128], strides = [1, 1]} : vector<8x512xf32> to vector<8x128xf32>
    %222 = math.tanh %221 : vector<8x128xf32>
    %223 = vector.extract_strided_slice %204 {offsets = [0, 384], sizes = [8, 128], strides = [1, 1]} : vector<8x512xf32> to vector<8x128xf32>
    %cst_111 = arith.constant 5.000000e-01 : f32
    %224 = vector.broadcast %cst_111 : f32 to vector<8x128xf32>
    %225 = arith.mulf %224, %223 : vector<8x128xf32>
    %226 = math.tanh %225 : vector<8x128xf32>
    %cst_112 = arith.constant 5.000000e-01 : f32
    %227 = vector.broadcast %cst_112 : f32 to vector<8x128xf32>
    %228 = arith.mulf %227, %226 : vector<8x128xf32>
    %cst_113 = arith.constant 5.000000e-01 : f32
    %229 = vector.broadcast %cst_113 : f32 to vector<8x128xf32>
    %230 = arith.addf %228, %229 : vector<8x128xf32>
    %231 = arith.mulf %220, %196 : vector<8x128xf32>
    %232 = arith.mulf %212, %222 : vector<8x128xf32>
    %233 = arith.addf %231, %232 : vector<8x128xf32>
    %234 = math.tanh %233 : vector<8x128xf32>
    %235 = arith.mulf %230, %234 : vector<8x128xf32>
    %c0_114 = arith.constant 0 : index
    %c0_115 = arith.constant 0 : index
    %236 = vector.load %arg5[%c0_114, %c0_115] : memref<8x128xf32, #tpu.memory_space<vmem>>, vector<8x128xf32>
    tpu.vector_store %arg5[%c0_114, %c0_115], %233 {strides = array<i32>} : memref<8x128xf32, #tpu.memory_space<vmem>>, vector<8x128xf32>,
    %c0_116 = arith.constant 0 : index
    %c0_117 = arith.constant 0 : index
    %237 = vector.load %arg4[%c0_116, %c0_117] : memref<8x128xf32, #tpu.memory_space<vmem>>, vector<8x128xf32>
    tpu.vector_store %arg4[%c0_116, %c0_117], %235 {strides = array<i32>} : memref<8x128xf32, #tpu.memory_space<vmem>>, vector<8x128xf32>,
    %238 = arith.truncf %235 : vector<8x128xf32> to vector<8x128xbf16>
    %239 = arith.index_cast %c4_i32 : i32 to index
    %c0_118 = arith.constant 0 : index
    %c0_119 = arith.constant 0 : index
    %240 = vector.load %arg3[%239, %c0_118, %c0_119] : memref<9x8x128xbf16, #tpu.memory_space<vmem>>, vector<1x8x128xbf16>
    %241 = vector.shape_cast %240 : vector<1x8x128xbf16> to vector<8x128xbf16>
    %242 = vector.shape_cast %238 : vector<8x128xbf16> to vector<1x8x128xbf16>
    tpu.vector_store %arg3[%239, %c0_118, %c0_119], %242 {strides = array<i32>} : memref<9x8x128xbf16, #tpu.memory_space<vmem>>, vector<1x8x128xbf16>,
    %c5_i32 = arith.constant 5 : i32
    %c0_120 = arith.constant 0 : index
    %c0_121 = arith.constant 0 : index
    %243 = vector.load %arg4[%c0_120, %c0_121] : memref<8x128xf32, #tpu.memory_space<vmem>>, vector<8x128xf32>
    %c0_122 = arith.constant 0 : index
    %c0_123 = arith.constant 0 : index
    %244 = vector.load %arg5[%c0_122, %c0_123] : memref<8x128xf32, #tpu.memory_space<vmem>>, vector<8x128xf32>
    %245 = arith.index_cast %c5_i32 : i32 to index
    %c0_124 = arith.constant 0 : index
    %c0_125 = arith.constant 0 : index
    %246 = vector.load %arg1[%245, %c0_124, %c0_125] : memref<9x8x512xbf16, #tpu.memory_space<vmem>>, vector<1x8x512xbf16>
    %247 = vector.shape_cast %246 : vector<1x8x512xbf16> to vector<8x512xbf16>
    %248 = arith.extf %247 : vector<8x512xbf16> to vector<8x512xf32>
    %249 = arith.truncf %243 : vector<8x128xf32> to vector<8x128xbf16>
    %c0_126 = arith.constant 0 : index
    %c0_127 = arith.constant 0 : index
    %250 = vector.load %arg2[%c0_126, %c0_127] : memref<128x512xbf16, #tpu.memory_space<vmem>>, vector<128x512xbf16>
    %cst_128 = arith.constant dense<0.000000e+00> : vector<8x512xf32>
    %251 = tpu.matmul %249, %250, %cst_128 {dimension_numbers = #tpu.dot_dimension_numbers<[1], [0], [0], [1], [0, 0, 1, 1], [], []>} : vector<8x128xbf16>, vector<128x512xbf16>, vector<8x512xf32> -> vector<8x512xf32>
    %252 = arith.addf %248, %251 : vector<8x512xf32>
    %253 = vector.extract_strided_slice %252 {offsets = [0, 0], sizes = [8, 128], strides = [1, 1]} : vector<8x512xf32> to vector<8x128xf32>
    %cst_129 = arith.constant 5.000000e-01 : f32
    %254 = vector.broadcast %cst_129 : f32 to vector<8x128xf32>
    %255 = arith.mulf %254, %253 : vector<8x128xf32>
    %256 = math.tanh %255 : vector<8x128xf32>
    %cst_130 = arith.constant 5.000000e-01 : f32
    %257 = vector.broadcast %cst_130 : f32 to vector<8x128xf32>
    %258 = arith.mulf %257, %256 : vector<8x128xf32>
    %cst_131 = arith.constant 5.000000e-01 : f32
    %259 = vector.broadcast %cst_131 : f32 to vector<8x128xf32>
    %260 = arith.addf %258, %259 : vector<8x128xf32>
    %261 = vector.extract_strided_slice %252 {offsets = [0, 128], sizes = [8, 128], strides = [1, 1]} : vector<8x512xf32> to vector<8x128xf32>
    %cst_132 = arith.constant 5.000000e-01 : f32
    %262 = vector.broadcast %cst_132 : f32 to vector<8x128xf32>
    %263 = arith.mulf %262, %261 : vector<8x128xf32>
    %264 = math.tanh %263 : vector<8x128xf32>
    %cst_133 = arith.constant 5.000000e-01 : f32
    %265 = vector.broadcast %cst_133 : f32 to vector<8x128xf32>
    %266 = arith.mulf %265, %264 : vector<8x128xf32>
    %cst_134 = arith.constant 5.000000e-01 : f32
    %267 = vector.broadcast %cst_134 : f32 to vector<8x128xf32>
    %268 = arith.addf %266, %267 : vector<8x128xf32>
    %269 = vector.extract_strided_slice %252 {offsets = [0, 256], sizes = [8, 128], strides = [1, 1]} : vector<8x512xf32> to vector<8x128xf32>
    %270 = math.tanh %269 : vector<8x128xf32>
    %271 = vector.extract_strided_slice %252 {offsets = [0, 384], sizes = [8, 128], strides = [1, 1]} : vector<8x512xf32> to vector<8x128xf32>
    %cst_135 = arith.constant 5.000000e-01 : f32
    %272 = vector.broadcast %cst_135 : f32 to vector<8x128xf32>
    %273 = arith.mulf %272, %271 : vector<8x128xf32>
    %274 = math.tanh %273 : vector<8x128xf32>
    %cst_136 = arith.constant 5.000000e-01 : f32
    %275 = vector.broadcast %cst_136 : f32 to vector<8x128xf32>
    %276 = arith.mulf %275, %274 : vector<8x128xf32>
    %cst_137 = arith.constant 5.000000e-01 : f32
    %277 = vector.broadcast %cst_137 : f32 to vector<8x128xf32>
    %278 = arith.addf %276, %277 : vector<8x128xf32>
    %279 = arith.mulf %268, %244 : vector<8x128xf32>
    %280 = arith.mulf %260, %270 : vector<8x128xf32>
    %281 = arith.addf %279, %280 : vector<8x128xf32>
    %282 = math.tanh %281 : vector<8x128xf32>
    %283 = arith.mulf %278, %282 : vector<8x128xf32>
    %c0_138 = arith.constant 0 : index
    %c0_139 = arith.constant 0 : index
    %284 = vector.load %arg5[%c0_138, %c0_139] : memref<8x128xf32, #tpu.memory_space<vmem>>, vector<8x128xf32>
    tpu.vector_store %arg5[%c0_138, %c0_139], %281 {strides = array<i32>} : memref<8x128xf32, #tpu.memory_space<vmem>>, vector<8x128xf32>,
    %c0_140 = arith.constant 0 : index
    %c0_141 = arith.constant 0 : index
    %285 = vector.load %arg4[%c0_140, %c0_141] : memref<8x128xf32, #tpu.memory_space<vmem>>, vector<8x128xf32>
    tpu.vector_store %arg4[%c0_140, %c0_141], %283 {strides = array<i32>} : memref<8x128xf32, #tpu.memory_space<vmem>>, vector<8x128xf32>,
    %286 = arith.truncf %283 : vector<8x128xf32> to vector<8x128xbf16>
    %287 = arith.index_cast %c5_i32 : i32 to index
    %c0_142 = arith.constant 0 : index
    %c0_143 = arith.constant 0 : index
    %288 = vector.load %arg3[%287, %c0_142, %c0_143] : memref<9x8x128xbf16, #tpu.memory_space<vmem>>, vector<1x8x128xbf16>
    %289 = vector.shape_cast %288 : vector<1x8x128xbf16> to vector<8x128xbf16>
    %290 = vector.shape_cast %286 : vector<8x128xbf16> to vector<1x8x128xbf16>
    tpu.vector_store %arg3[%287, %c0_142, %c0_143], %290 {strides = array<i32>} : memref<9x8x128xbf16, #tpu.memory_space<vmem>>, vector<1x8x128xbf16>,
    %c6_i32 = arith.constant 6 : i32
    %c0_144 = arith.constant 0 : index
    %c0_145 = arith.constant 0 : index
    %291 = vector.load %arg4[%c0_144, %c0_145] : memref<8x128xf32, #tpu.memory_space<vmem>>, vector<8x128xf32>
    %c0_146 = arith.constant 0 : index
    %c0_147 = arith.constant 0 : index
    %292 = vector.load %arg5[%c0_146, %c0_147] : memref<8x128xf32, #tpu.memory_space<vmem>>, vector<8x128xf32>
    %293 = arith.index_cast %c6_i32 : i32 to index
    %c0_148 = arith.constant 0 : index
    %c0_149 = arith.constant 0 : index
    %294 = vector.load %arg1[%293, %c0_148, %c0_149] : memref<9x8x512xbf16, #tpu.memory_space<vmem>>, vector<1x8x512xbf16>
    %295 = vector.shape_cast %294 : vector<1x8x512xbf16> to vector<8x512xbf16>
    %296 = arith.extf %295 : vector<8x512xbf16> to vector<8x512xf32>
    %297 = arith.truncf %291 : vector<8x128xf32> to vector<8x128xbf16>
    %c0_150 = arith.constant 0 : index
    %c0_151 = arith.constant 0 : index
    %298 = vector.load %arg2[%c0_150, %c0_151] : memref<128x512xbf16, #tpu.memory_space<vmem>>, vector<128x512xbf16>
    %cst_152 = arith.constant dense<0.000000e+00> : vector<8x512xf32>
    %299 = tpu.matmul %297, %298, %cst_152 {dimension_numbers = #tpu.dot_dimension_numbers<[1], [0], [0], [1], [0, 0, 1, 1], [], []>} : vector<8x128xbf16>, vector<128x512xbf16>, vector<8x512xf32> -> vector<8x512xf32>
    %300 = arith.addf %296, %299 : vector<8x512xf32>
    %301 = vector.extract_strided_slice %300 {offsets = [0, 0], sizes = [8, 128], strides = [1, 1]} : vector<8x512xf32> to vector<8x128xf32>
    %cst_153 = arith.constant 5.000000e-01 : f32
    %302 = vector.broadcast %cst_153 : f32 to vector<8x128xf32>
    %303 = arith.mulf %302, %301 : vector<8x128xf32>
    %304 = math.tanh %303 : vector<8x128xf32>
    %cst_154 = arith.constant 5.000000e-01 : f32
    %305 = vector.broadcast %cst_154 : f32 to vector<8x128xf32>
    %306 = arith.mulf %305, %304 : vector<8x128xf32>
    %cst_155 = arith.constant 5.000000e-01 : f32
    %307 = vector.broadcast %cst_155 : f32 to vector<8x128xf32>
    %308 = arith.addf %306, %307 : vector<8x128xf32>
    %309 = vector.extract_strided_slice %300 {offsets = [0, 128], sizes = [8, 128], strides = [1, 1]} : vector<8x512xf32> to vector<8x128xf32>
    %cst_156 = arith.constant 5.000000e-01 : f32
    %310 = vector.broadcast %cst_156 : f32 to vector<8x128xf32>
    %311 = arith.mulf %310, %309 : vector<8x128xf32>
    %312 = math.tanh %311 : vector<8x128xf32>
    %cst_157 = arith.constant 5.000000e-01 : f32
    %313 = vector.broadcast %cst_157 : f32 to vector<8x128xf32>
    %314 = arith.mulf %313, %312 : vector<8x128xf32>
    %cst_158 = arith.constant 5.000000e-01 : f32
    %315 = vector.broadcast %cst_158 : f32 to vector<8x128xf32>
    %316 = arith.addf %314, %315 : vector<8x128xf32>
    %317 = vector.extract_strided_slice %300 {offsets = [0, 256], sizes = [8, 128], strides = [1, 1]} : vector<8x512xf32> to vector<8x128xf32>
    %318 = math.tanh %317 : vector<8x128xf32>
    %319 = vector.extract_strided_slice %300 {offsets = [0, 384], sizes = [8, 128], strides = [1, 1]} : vector<8x512xf32> to vector<8x128xf32>
    %cst_159 = arith.constant 5.000000e-01 : f32
    %320 = vector.broadcast %cst_159 : f32 to vector<8x128xf32>
    %321 = arith.mulf %320, %319 : vector<8x128xf32>
    %322 = math.tanh %321 : vector<8x128xf32>
    %cst_160 = arith.constant 5.000000e-01 : f32
    %323 = vector.broadcast %cst_160 : f32 to vector<8x128xf32>
    %324 = arith.mulf %323, %322 : vector<8x128xf32>
    %cst_161 = arith.constant 5.000000e-01 : f32
    %325 = vector.broadcast %cst_161 : f32 to vector<8x128xf32>
    %326 = arith.addf %324, %325 : vector<8x128xf32>
    %327 = arith.mulf %316, %292 : vector<8x128xf32>
    %328 = arith.mulf %308, %318 : vector<8x128xf32>
    %329 = arith.addf %327, %328 : vector<8x128xf32>
    %330 = math.tanh %329 : vector<8x128xf32>
    %331 = arith.mulf %326, %330 : vector<8x128xf32>
    %c0_162 = arith.constant 0 : index
    %c0_163 = arith.constant 0 : index
    %332 = vector.load %arg5[%c0_162, %c0_163] : memref<8x128xf32, #tpu.memory_space<vmem>>, vector<8x128xf32>
    tpu.vector_store %arg5[%c0_162, %c0_163], %329 {strides = array<i32>} : memref<8x128xf32, #tpu.memory_space<vmem>>, vector<8x128xf32>,
    %c0_164 = arith.constant 0 : index
    %c0_165 = arith.constant 0 : index
    %333 = vector.load %arg4[%c0_164, %c0_165] : memref<8x128xf32, #tpu.memory_space<vmem>>, vector<8x128xf32>
    tpu.vector_store %arg4[%c0_164, %c0_165], %331 {strides = array<i32>} : memref<8x128xf32, #tpu.memory_space<vmem>>, vector<8x128xf32>,
    %334 = arith.truncf %331 : vector<8x128xf32> to vector<8x128xbf16>
    %335 = arith.index_cast %c6_i32 : i32 to index
    %c0_166 = arith.constant 0 : index
    %c0_167 = arith.constant 0 : index
    %336 = vector.load %arg3[%335, %c0_166, %c0_167] : memref<9x8x128xbf16, #tpu.memory_space<vmem>>, vector<1x8x128xbf16>
    %337 = vector.shape_cast %336 : vector<1x8x128xbf16> to vector<8x128xbf16>
    %338 = vector.shape_cast %334 : vector<8x128xbf16> to vector<1x8x128xbf16>
    tpu.vector_store %arg3[%335, %c0_166, %c0_167], %338 {strides = array<i32>} : memref<9x8x128xbf16, #tpu.memory_space<vmem>>, vector<1x8x128xbf16>,
    %c7_i32 = arith.constant 7 : i32
    %c0_168 = arith.constant 0 : index
    %c0_169 = arith.constant 0 : index
    %339 = vector.load %arg4[%c0_168, %c0_169] : memref<8x128xf32, #tpu.memory_space<vmem>>, vector<8x128xf32>
    %c0_170 = arith.constant 0 : index
    %c0_171 = arith.constant 0 : index
    %340 = vector.load %arg5[%c0_170, %c0_171] : memref<8x128xf32, #tpu.memory_space<vmem>>, vector<8x128xf32>
    %341 = arith.index_cast %c7_i32 : i32 to index
    %c0_172 = arith.constant 0 : index
    %c0_173 = arith.constant 0 : index
    %342 = vector.load %arg1[%341, %c0_172, %c0_173] : memref<9x8x512xbf16, #tpu.memory_space<vmem>>, vector<1x8x512xbf16>
    %343 = vector.shape_cast %342 : vector<1x8x512xbf16> to vector<8x512xbf16>
    %344 = arith.extf %343 : vector<8x512xbf16> to vector<8x512xf32>
    %345 = arith.truncf %339 : vector<8x128xf32> to vector<8x128xbf16>
    %c0_174 = arith.constant 0 : index
    %c0_175 = arith.constant 0 : index
    %346 = vector.load %arg2[%c0_174, %c0_175] : memref<128x512xbf16, #tpu.memory_space<vmem>>, vector<128x512xbf16>
    %cst_176 = arith.constant dense<0.000000e+00> : vector<8x512xf32>
    %347 = tpu.matmul %345, %346, %cst_176 {dimension_numbers = #tpu.dot_dimension_numbers<[1], [0], [0], [1], [0, 0, 1, 1], [], []>} : vector<8x128xbf16>, vector<128x512xbf16>, vector<8x512xf32> -> vector<8x512xf32>
    %348 = arith.addf %344, %347 : vector<8x512xf32>
    %349 = vector.extract_strided_slice %348 {offsets = [0, 0], sizes = [8, 128], strides = [1, 1]} : vector<8x512xf32> to vector<8x128xf32>
    %cst_177 = arith.constant 5.000000e-01 : f32
    %350 = vector.broadcast %cst_177 : f32 to vector<8x128xf32>
    %351 = arith.mulf %350, %349 : vector<8x128xf32>
    %352 = math.tanh %351 : vector<8x128xf32>
    %cst_178 = arith.constant 5.000000e-01 : f32
    %353 = vector.broadcast %cst_178 : f32 to vector<8x128xf32>
    %354 = arith.mulf %353, %352 : vector<8x128xf32>
    %cst_179 = arith.constant 5.000000e-01 : f32
    %355 = vector.broadcast %cst_179 : f32 to vector<8x128xf32>
    %356 = arith.addf %354, %355 : vector<8x128xf32>
    %357 = vector.extract_strided_slice %348 {offsets = [0, 128], sizes = [8, 128], strides = [1, 1]} : vector<8x512xf32> to vector<8x128xf32>
    %cst_180 = arith.constant 5.000000e-01 : f32
    %358 = vector.broadcast %cst_180 : f32 to vector<8x128xf32>
    %359 = arith.mulf %358, %357 : vector<8x128xf32>
    %360 = math.tanh %359 : vector<8x128xf32>
    %cst_181 = arith.constant 5.000000e-01 : f32
    %361 = vector.broadcast %cst_181 : f32 to vector<8x128xf32>
    %362 = arith.mulf %361, %360 : vector<8x128xf32>
    %cst_182 = arith.constant 5.000000e-01 : f32
    %363 = vector.broadcast %cst_182 : f32 to vector<8x128xf32>
    %364 = arith.addf %362, %363 : vector<8x128xf32>
    %365 = vector.extract_strided_slice %348 {offsets = [0, 256], sizes = [8, 128], strides = [1, 1]} : vector<8x512xf32> to vector<8x128xf32>
    %366 = math.tanh %365 : vector<8x128xf32>
    %367 = vector.extract_strided_slice %348 {offsets = [0, 384], sizes = [8, 128], strides = [1, 1]} : vector<8x512xf32> to vector<8x128xf32>
    %cst_183 = arith.constant 5.000000e-01 : f32
    %368 = vector.broadcast %cst_183 : f32 to vector<8x128xf32>
    %369 = arith.mulf %368, %367 : vector<8x128xf32>
    %370 = math.tanh %369 : vector<8x128xf32>
    %cst_184 = arith.constant 5.000000e-01 : f32
    %371 = vector.broadcast %cst_184 : f32 to vector<8x128xf32>
    %372 = arith.mulf %371, %370 : vector<8x128xf32>
    %cst_185 = arith.constant 5.000000e-01 : f32
    %373 = vector.broadcast %cst_185 : f32 to vector<8x128xf32>
    %374 = arith.addf %372, %373 : vector<8x128xf32>
    %375 = arith.mulf %364, %340 : vector<8x128xf32>
    %376 = arith.mulf %356, %366 : vector<8x128xf32>
    %377 = arith.addf %375, %376 : vector<8x128xf32>
    %378 = math.tanh %377 : vector<8x128xf32>
    %379 = arith.mulf %374, %378 : vector<8x128xf32>
    %c0_186 = arith.constant 0 : index
    %c0_187 = arith.constant 0 : index
    %380 = vector.load %arg5[%c0_186, %c0_187] : memref<8x128xf32, #tpu.memory_space<vmem>>, vector<8x128xf32>
    tpu.vector_store %arg5[%c0_186, %c0_187], %377 {strides = array<i32>} : memref<8x128xf32, #tpu.memory_space<vmem>>, vector<8x128xf32>,
    %c0_188 = arith.constant 0 : index
    %c0_189 = arith.constant 0 : index
    %381 = vector.load %arg4[%c0_188, %c0_189] : memref<8x128xf32, #tpu.memory_space<vmem>>, vector<8x128xf32>
    tpu.vector_store %arg4[%c0_188, %c0_189], %379 {strides = array<i32>} : memref<8x128xf32, #tpu.memory_space<vmem>>, vector<8x128xf32>,
    %382 = arith.truncf %379 : vector<8x128xf32> to vector<8x128xbf16>
    %383 = arith.index_cast %c7_i32 : i32 to index
    %c0_190 = arith.constant 0 : index
    %c0_191 = arith.constant 0 : index
    %384 = vector.load %arg3[%383, %c0_190, %c0_191] : memref<9x8x128xbf16, #tpu.memory_space<vmem>>, vector<1x8x128xbf16>
    %385 = vector.shape_cast %384 : vector<1x8x128xbf16> to vector<8x128xbf16>
    %386 = vector.shape_cast %382 : vector<8x128xbf16> to vector<1x8x128xbf16>
    tpu.vector_store %arg3[%383, %c0_190, %c0_191], %386 {strides = array<i32>} : memref<9x8x128xbf16, #tpu.memory_space<vmem>>, vector<1x8x128xbf16>,
    %c8_i32 = arith.constant 8 : i32
    %c0_192 = arith.constant 0 : index
    %c0_193 = arith.constant 0 : index
    %387 = vector.load %arg4[%c0_192, %c0_193] : memref<8x128xf32, #tpu.memory_space<vmem>>, vector<8x128xf32>
    %c0_194 = arith.constant 0 : index
    %c0_195 = arith.constant 0 : index
    %388 = vector.load %arg5[%c0_194, %c0_195] : memref<8x128xf32, #tpu.memory_space<vmem>>, vector<8x128xf32>
    %389 = arith.index_cast %c8_i32 : i32 to index
    %c0_196 = arith.constant 0 : index
    %c0_197 = arith.constant 0 : index
    %390 = vector.load %arg1[%389, %c0_196, %c0_197] : memref<9x8x512xbf16, #tpu.memory_space<vmem>>, vector<1x8x512xbf16>
    %391 = vector.shape_cast %390 : vector<1x8x512xbf16> to vector<8x512xbf16>
    %392 = arith.extf %391 : vector<8x512xbf16> to vector<8x512xf32>
    %393 = arith.truncf %387 : vector<8x128xf32> to vector<8x128xbf16>
    %c0_198 = arith.constant 0 : index
    %c0_199 = arith.constant 0 : index
    %394 = vector.load %arg2[%c0_198, %c0_199] : memref<128x512xbf16, #tpu.memory_space<vmem>>, vector<128x512xbf16>
    %cst_200 = arith.constant dense<0.000000e+00> : vector<8x512xf32>
    %395 = tpu.matmul %393, %394, %cst_200 {dimension_numbers = #tpu.dot_dimension_numbers<[1], [0], [0], [1], [0, 0, 1, 1], [], []>} : vector<8x128xbf16>, vector<128x512xbf16>, vector<8x512xf32> -> vector<8x512xf32>
    %396 = arith.addf %392, %395 : vector<8x512xf32>
    %397 = vector.extract_strided_slice %396 {offsets = [0, 0], sizes = [8, 128], strides = [1, 1]} : vector<8x512xf32> to vector<8x128xf32>
    %cst_201 = arith.constant 5.000000e-01 : f32
    %398 = vector.broadcast %cst_201 : f32 to vector<8x128xf32>
    %399 = arith.mulf %398, %397 : vector<8x128xf32>
    %400 = math.tanh %399 : vector<8x128xf32>
    %cst_202 = arith.constant 5.000000e-01 : f32
    %401 = vector.broadcast %cst_202 : f32 to vector<8x128xf32>
    %402 = arith.mulf %401, %400 : vector<8x128xf32>
    %cst_203 = arith.constant 5.000000e-01 : f32
    %403 = vector.broadcast %cst_203 : f32 to vector<8x128xf32>
    %404 = arith.addf %402, %403 : vector<8x128xf32>
    %405 = vector.extract_strided_slice %396 {offsets = [0, 128], sizes = [8, 128], strides = [1, 1]} : vector<8x512xf32> to vector<8x128xf32>
    %cst_204 = arith.constant 5.000000e-01 : f32
    %406 = vector.broadcast %cst_204 : f32 to vector<8x128xf32>
    %407 = arith.mulf %406, %405 : vector<8x128xf32>
    %408 = math.tanh %407 : vector<8x128xf32>
    %cst_205 = arith.constant 5.000000e-01 : f32
    %409 = vector.broadcast %cst_205 : f32 to vector<8x128xf32>
    %410 = arith.mulf %409, %408 : vector<8x128xf32>
    %cst_206 = arith.constant 5.000000e-01 : f32
    %411 = vector.broadcast %cst_206 : f32 to vector<8x128xf32>
    %412 = arith.addf %410, %411 : vector<8x128xf32>
    %413 = vector.extract_strided_slice %396 {offsets = [0, 256], sizes = [8, 128], strides = [1, 1]} : vector<8x512xf32> to vector<8x128xf32>
    %414 = math.tanh %413 : vector<8x128xf32>
    %415 = vector.extract_strided_slice %396 {offsets = [0, 384], sizes = [8, 128], strides = [1, 1]} : vector<8x512xf32> to vector<8x128xf32>
    %cst_207 = arith.constant 5.000000e-01 : f32
    %416 = vector.broadcast %cst_207 : f32 to vector<8x128xf32>
    %417 = arith.mulf %416, %415 : vector<8x128xf32>
    %418 = math.tanh %417 : vector<8x128xf32>
    %cst_208 = arith.constant 5.000000e-01 : f32
    %419 = vector.broadcast %cst_208 : f32 to vector<8x128xf32>
    %420 = arith.mulf %419, %418 : vector<8x128xf32>
    %cst_209 = arith.constant 5.000000e-01 : f32
    %421 = vector.broadcast %cst_209 : f32 to vector<8x128xf32>
    %422 = arith.addf %420, %421 : vector<8x128xf32>
    %423 = arith.mulf %412, %388 : vector<8x128xf32>
    %424 = arith.mulf %404, %414 : vector<8x128xf32>
    %425 = arith.addf %423, %424 : vector<8x128xf32>
    %426 = math.tanh %425 : vector<8x128xf32>
    %427 = arith.mulf %422, %426 : vector<8x128xf32>
    %c0_210 = arith.constant 0 : index
    %c0_211 = arith.constant 0 : index
    %428 = vector.load %arg5[%c0_210, %c0_211] : memref<8x128xf32, #tpu.memory_space<vmem>>, vector<8x128xf32>
    tpu.vector_store %arg5[%c0_210, %c0_211], %425 {strides = array<i32>} : memref<8x128xf32, #tpu.memory_space<vmem>>, vector<8x128xf32>,
    %c0_212 = arith.constant 0 : index
    %c0_213 = arith.constant 0 : index
    %429 = vector.load %arg4[%c0_212, %c0_213] : memref<8x128xf32, #tpu.memory_space<vmem>>, vector<8x128xf32>
    tpu.vector_store %arg4[%c0_212, %c0_213], %427 {strides = array<i32>} : memref<8x128xf32, #tpu.memory_space<vmem>>, vector<8x128xf32>,
    %430 = arith.truncf %427 : vector<8x128xf32> to vector<8x128xbf16>
    %431 = arith.index_cast %c8_i32 : i32 to index
    %c0_214 = arith.constant 0 : index
    %c0_215 = arith.constant 0 : index
    %432 = vector.load %arg3[%431, %c0_214, %c0_215] : memref<9x8x128xbf16, #tpu.memory_space<vmem>>, vector<1x8x128xbf16>
    %433 = vector.shape_cast %432 : vector<1x8x128xbf16> to vector<8x128xbf16>
    %434 = vector.shape_cast %430 : vector<8x128xbf16> to vector<1x8x128xbf16>
    tpu.vector_store %arg3[%431, %c0_214, %c0_215], %434 {strides = array<i32>} : memref<9x8x128xbf16, #tpu.memory_space<vmem>>, vector<1x8x128xbf16>,
    %c9_i32 = arith.constant 9 : i32
    return
  }
  func.func @transform_0(%arg0: i32) -> (i32, i32, i32) {
    %c0_i32 = arith.constant 0 : i32
    %c0_i32_0 = arith.constant 0 : i32
    %c0_i32_1 = arith.constant 0 : i32
    return %arg0, %c0_i32, %c0_i32_0 : i32, i32, i32
  }
  func.func @transform_1(%arg0: i32) -> (i32, i32) {
    %c0_i32 = arith.constant 0 : i32
    %c0_i32_0 = arith.constant 0 : i32
    %c0_i32_1 = arith.constant 0 : i32
    return %c0_i32, %c0_i32_0 : i32, i32
  }
  func.func @transform_2(%arg0: i32) -> (i32, i32, i32) {
    %c0_i32 = arith.constant 0 : i32
    %c0_i32_0 = arith.constant 0 : i32
    %c0_i32_1 = arith.constant 0 : i32
    return %arg0, %c0_i32, %c0_i32_0 : i32, i32, i32
  }
}

module attributes {stable_mosaic.version = 11 : i64} {
  func.func @_matmul_bias_kernel(%arg0: i32, %arg1: i32, %arg2: memref<24x128xbf16, #tpu.memory_space<vmem>>, %arg3: memref<128x128xbf16, #tpu.memory_space<vmem>>, %arg4: memref<1x128xf32, #tpu.memory_space<vmem>>, %arg5: memref<24x128xf32, #tpu.memory_space<vmem>>) attributes {dimension_semantics = [#tpu.dimension_semantics<parallel>, #tpu.dimension_semantics<parallel>], iteration_bounds = array<i64: 1, 1>, scalar_prefetch = 0 : i64, scratch_operands = 0 : i64, tpu.core_type = #tpu.core_type<tc>, window_params = [{transform_indices = @transform_0, window_bounds = array<i64: 24, 128>}, {transform_indices = @transform_1, window_bounds = array<i64: 128, 128>}, {transform_indices = @transform_2, window_bounds = array<i64: 1, 128>}, {transform_indices = @transform_3, window_bounds = array<i64: 24, 128>}]} {
    %c0 = arith.constant 0 : index
    %c0_0 = arith.constant 0 : index
    %0 = vector.load %arg2[%c0, %c0_0] : memref<24x128xbf16, #tpu.memory_space<vmem>>, vector<24x128xbf16>
    %c0_1 = arith.constant 0 : index
    %c0_2 = arith.constant 0 : index
    %1 = vector.load %arg3[%c0_1, %c0_2] : memref<128x128xbf16, #tpu.memory_space<vmem>>, vector<128x128xbf16>
    %cst = arith.constant dense<0.000000e+00> : vector<24x128xf32>
    %2 = tpu.matmul %0, %1, %cst {dimension_numbers = #tpu.dot_dimension_numbers<[1], [0], [0], [1], [0, 0, 1, 1], [], []>} : vector<24x128xbf16>, vector<128x128xbf16>, vector<24x128xf32> -> vector<24x128xf32>
    %c0_3 = arith.constant 0 : index
    %c0_4 = arith.constant 0 : index
    %3 = vector.load %arg4[%c0_3, %c0_4] : memref<1x128xf32, #tpu.memory_space<vmem>>, vector<1x128xf32>
    %4 = vector.broadcast %3 : vector<1x128xf32> to vector<24x128xf32>
    %5 = arith.addf %2, %4 : vector<24x128xf32>
    %c0_5 = arith.constant 0 : index
    %c0_6 = arith.constant 0 : index
    %6 = vector.load %arg5[%c0_5, %c0_6] : memref<24x128xf32, #tpu.memory_space<vmem>>, vector<24x128xf32>
    tpu.vector_store %arg5[%c0_5, %c0_6], %5 {strides = array<i32>} : memref<24x128xf32, #tpu.memory_space<vmem>>, vector<24x128xf32>,
    return
  }
  func.func @transform_0(%arg0: i32, %arg1: i32) -> (i32, i32) {
    %c0_i32 = arith.constant 0 : i32
    %c0_i32_0 = arith.constant 0 : i32
    return %arg0, %c0_i32 : i32, i32
  }
  func.func @transform_1(%arg0: i32, %arg1: i32) -> (i32, i32) {
    %c0_i32 = arith.constant 0 : i32
    %c0_i32_0 = arith.constant 0 : i32
    return %c0_i32, %arg1 : i32, i32
  }
  func.func @transform_2(%arg0: i32, %arg1: i32) -> (i32, i32) {
    %c0_i32 = arith.constant 0 : i32
    %c0_i32_0 = arith.constant 0 : i32
    return %c0_i32, %arg1 : i32, i32
  }
  func.func @transform_3(%arg0: i32, %arg1: i32) -> (i32, i32) {
    %c0_i32 = arith.constant 0 : i32
    return %arg0, %arg1 : i32, i32
  }
}

</mosaic_0001>

<bundles_post_ra>
// kernel: decoder_rnn_forward.5
= control target key start
LH: loop header
LB: loop body
LE: loop exit
PB: predicated region body
PF: predicated region fallthrough
CT: control target
= control target key end

     0   :  { %s267_s1 = inlined_call_operand.vmem [shape: bf16[128,128], index: 1, kind: input, shape index: {}]   ;;  %s268_s0 = inlined_call_operand.vmem [shape: bf16[24,128], index: 0, kind: input, shape index: {}]   ;;  %s269_s2 = inlined_call_operand.vmem [shape: f32[1,128], index: 2, kind: input, shape index: {}]   ;;  %s270_s3 = inlined_call_operand.vmem [shape: f32[24,128], index: 3, kind: output, shape index: {}]  }
   0x1   :  { %v195_v0 = vld [vmem:[%s267_s1] sm:$0xff]   ;;  %v196_v1 = vld [vmem:[%s267_s1 + $0x8] sm:$0xff]   ;;  %v197_v2 = vld [vmem:[%s267_s1 + $0x10] sm:$0xff]  }
   0x2   :  { %175 = vmatprep.subr.bf16.mxu0 %v195_v0  ;;  %v198_v3 = vld [vmem:[%s267_s1 + $0x18] sm:$0xff]   ;;  %v203_v4 = vld [vmem:[%s268_s0] sm:$0xff]   ;;  %v200_v6 = vld [vmem:[%s267_s1 + $0x28] sm:$0xff]  }
   0x3   :  { %176 = vmatpush3.bf16.msra.mxu0 %v195_v0  ;;  %191 = vmatprep.mubr.bf16.mxu0 %v203_v4  ;;  %v199_v5 = vld [vmem:[%s267_s1 + $0x20] sm:$0xff]   ;;  %v201_v7 = vld [vmem:[%s267_s1 + $0x30] sm:$0xff]   ;;  %v202_v8 = vld [vmem:[%s267_s1 + $0x38] sm:$0xff]  }
   0x4   :  { %177 = vmatprep.subr.bf16.mxu0 %v196_v1  ;;  %v204_v9 = vld [vmem:[%s268_s0 + $0x8] ss:$0 sps:$4 sm:$0xff]   ;;  %v154_v10 = vld [vmem:[%s269_s2] ss:$0 sm:$0xff] }
   0x7   :  { %178 = vmatpush3.bf16.msra.mxu0 %v196_v1 }
   0x8   :  { %179 = vmatprep.subr.bf16.mxu0 %v197_v2 }
   0xb   :  { %180 = vmatpush3.bf16.msra.mxu0 %v197_v2 }
   0xc   :  { %181 = vmatprep.subr.bf16.mxu0 %v198_v3 }
   0xf   :  { %182 = vmatpush3.bf16.msra.mxu0 %v198_v3 }
  0x10   :  { %183 = vmatprep.subr.bf16.mxu0 %v199_v5 }
  0x13   :  { %184 = vmatpush3.bf16.msra.mxu0 %v199_v5 }
  0x14   :  { %185 = vmatprep.subr.bf16.mxu0 %v200_v6 }
  0x17   :  { %186 = vmatpush3.bf16.msra.mxu0 %v200_v6 }
  0x18   :  { %187 = vmatprep.subr.bf16.mxu0 %v201_v7 }
  0x1b   :  { %188 = vmatpush3.bf16.msra.mxu0 %v201_v7 }
  0x1c   :  { %189 = vmatprep.subr.bf16.mxu0 %v202_v8 }
  0x1f   :  { %190 = vmatpush3.bf16.msra.mxu0 %v202_v8 }
  0x22   :  { %192 = vmatmul.mubr.bf16.vlgmr.msra.gmra.mrb[0].mxu0 %v204_v9 }
  0xf5   :  { %v193_v11 = vpop.f32.mrb[0].mxu0 }
  0xf6   :  { %v142_v12 = vadd.f32 %v193_v11, %v154_v10  ;;  %v133_v13 = vpop.f32.mrb[1].mxu0 }
  0xf7   :  { %v134_v14 = vadd.f32 %v154_v10, %v133_v13  ;;  %v194_v15 = vpop.f32.mrb[2].mxu0 }
  0xf8   :  { %149 = vst [vmem:[%s270_s3 + $0x10] sm:$0xff] %v142_v12  ;;  %v136_v16 = vpop.f32.mrb[3].mxu0 }
  0xf9   :  { %147 = vst [vmem:[%s270_s3] sm:$0xff] %v134_v14  ;;  %v137_v17 = vadd.f32 %v154_v10, %v136_v16 }
  0xfb   :  { %148 = vst [vmem:[%s270_s3 + $0x8] sm:$0xff] %v137_v17 }

// kernel: decoder_rnn_forward.3
= control target key start
LH: loop header
LB: loop body
LE: loop exit
PB: predicated region body
PF: predicated region fallthrough
CT: control target
= control target key end

     0   :  { %v689_v1 = vmov 0   ;;  %v58_v38 = vlaneseq  ;;  %s932_s1 = inlined_call_operand.vmem [shape: bf16[128,512], index: 1, kind: input, shape index: {}]   ;;  %s933_s0 = inlined_call_operand.vmem [shape: bf16[72,128], index: 0, kind: input, shape index: {}]   ;;  %s934_s2 = inlined_call_operand.vmem [shape: f32[1,512], index: 2, kind: input, shape index: {}]   ;;  %s935_s3 = inlined_call_operand.vmem [shape: bf16[72,512], index: 3, kind: output, shape index: {}]  }
   0x1   :  { %v636_v0 = vld [vmem:[%s932_s1 + $0x4] ss:$16 sps:$4 sm:$0xff]   ;;  %298 = vmatprep.mubr.bf16.mxu0 %v689_v1  ;;  %379 = vmatprep.mubr.bf16.mxu1 %v689_v1  ;;  %v638_v2 = vld [vmem:[%s932_s1 + $0xc] ss:$16 sps:$4 sm:$0xff]   ;;  %v640_v3 = vld [vmem:[%s932_s1] ss:$16 sps:$4 sm:$0xff]  }
   0x2   :  { %266 = vmatprep.subr.bf16.mxu0 %v636_v0  ;;  %v641_v4 = vld [vmem:[%s932_s1 + $0x8] ss:$16 sps:$4 sm:$0xff]   ;;  %347 = vmatprep.subr.bf16.mxu1 %v638_v2  ;;  %v642_v5 = vld [vmem:[%s932_s1 + $0x24] ss:$16 sps:$4 sm:$0xff]   ;;  %v644_v6 = vld [vmem:[%s932_s1 + $0x2c] ss:$16 sps:$4 sm:$0xff]  }
   0x3   :  { %267 = vmatpush1.bf16.msra.mxu0 %v640_v3  ;;  %348 = vmatpush1.bf16.msra.mxu1 %v641_v4  ;;  %v646_v7 = vld [vmem:[%s932_s1 + $0x20] ss:$16 sps:$4 sm:$0xff]   ;;  %v647_v8 = vld [vmem:[%s932_s1 + $0x28] ss:$16 sps:$4 sm:$0xff]   ;;  %v648_v9 = vld [vmem:[%s932_s1 + $0x44] ss:$16 sps:$4 sm:$0xff]  }
   0x4   :  { %268 = vmatprep.subr.bf16.mxu0 %v642_v5  ;;  %349 = vmatprep.subr.bf16.mxu1 %v644_v6  ;;  %v650_v10 = vld [vmem:[%s932_s1 + $0x4c] ss:$16 sps:$4 sm:$0xff]   ;;  %v652_v11 = vld [vmem:[%s932_s1 + $0x40] ss:$16 sps:$4 sm:$0xff]   ;;  %v653_v12 = vld [vmem:[%s932_s1 + $0x48] ss:$16 sps:$4 sm:$0xff]  }
   0x5   :  { %v654_v13 = vld [vmem:[%s932_s1 + $0x64] ss:$16 sps:$4 sm:$0xff]   ;;  %v656_v14 = vld [vmem:[%s932_s1 + $0x6c] ss:$16 sps:$4 sm:$0xff]   ;;  %v658_v15 = vld [vmem:[%s932_s1 + $0x60] ss:$16 sps:$4 sm:$0xff]  }
   0x6   :  { %v659_v16 = vld [vmem:[%s932_s1 + $0x68] ss:$16 sps:$4 sm:$0xff]   ;;  %v660_v17 = vld [vmem:[%s932_s1 + $0x84] ss:$16 sps:$4 sm:$0xff]   ;;  %v662_v18 = vld [vmem:[%s932_s1 + $0x8c] ss:$16 sps:$4 sm:$0xff]  }
   0x7   :  { %269 = vmatpush1.bf16.msra.mxu0 %v646_v7  ;;  %350 = vmatpush1.bf16.msra.mxu1 %v647_v8  ;;  %v664_v19 = vld [vmem:[%s932_s1 + $0x80] ss:$16 sps:$4 sm:$0xff]   ;;  %v665_v20 = vld [vmem:[%s932_s1 + $0x88] ss:$16 sps:$4 sm:$0xff]   ;;  %v666_v21 = vld [vmem:[%s932_s1 + $0xa4] ss:$16 sps:$4 sm:$0xff]  }
   0x8   :  { %270 = vmatprep.subr.bf16.mxu0 %v648_v9  ;;  %351 = vmatprep.subr.bf16.mxu1 %v650_v10  ;;  %v668_v22 = vld [vmem:[%s932_s1 + $0xac] ss:$16 sps:$4 sm:$0xff]   ;;  %v670_v23 = vld [vmem:[%s932_s1 + $0xa0] ss:$16 sps:$4 sm:$0xff]   ;;  %v671_v24 = vld [vmem:[%s932_s1 + $0xa8] ss:$16 sps:$4 sm:$0xff]  }
   0x9   :  { %v672_v25 = vld [vmem:[%s932_s1 + $0xc4] ss:$16 sps:$4 sm:$0xff]   ;;  %v674_v26 = vld [vmem:[%s932_s1 + $0xcc] ss:$16 sps:$4 sm:$0xff]   ;;  %v676_v27 = vld [vmem:[%s932_s1 + $0xc0] ss:$16 sps:$4 sm:$0xff]  }
   0xa   :  { %v677_v28 = vld [vmem:[%s932_s1 + $0xc8] ss:$16 sps:$4 sm:$0xff]   ;;  %v678_v29 = vld [vmem:[%s932_s1 + $0xe4] ss:$16 sps:$4 sm:$0xff]   ;;  %v680_v30 = vld [vmem:[%s932_s1 + $0xec] ss:$16 sps:$4 sm:$0xff]  }
   0xb   :  { %271 = vmatpush1.bf16.msra.mxu0 %v652_v11  ;;  %352 = vmatpush1.bf16.msra.mxu1 %v653_v12  ;;  %v682_v31 = vld [vmem:[%s932_s1 + $0xe0] ss:$16 sps:$4 sm:$0xff]   ;;  %v683_v32 = vld [vmem:[%s932_s1 + $0xe8] ss:$16 sps:$4 sm:$0xff]   ;;  %v59_v39 = vshrl.u32 %v58_v38, 7 }
   0xc   :  { %272 = vmatprep.subr.bf16.mxu0 %v654_v13  ;;  %353 = vmatprep.subr.bf16.mxu1 %v656_v14  ;;  %v684_v33 = vld [vmem:[%s933_s0] sm:$0xff]   ;;  %v685_v34 = vld [vmem:[%s933_s0 + $0x8] sm:$0xff]   ;;  %v686_v35 = vld [vmem:[%s933_s0 + $0x10] sm:$0xff]  }
   0xd   :  { %v687_v36 = vld [vmem:[%s933_s0 + $0x18] sm:$0xff]   ;;  %v688_v37 = vld [vmem:[%s933_s0 + $0x20] ss:$0 sps:$4 sm:$0xff]   ;;  %v60_v40 = vsub.s32 0, %v59_v39  ;;  %v68_v41 = vsub.s32 2, %v59_v39  ;;  %v64_v43 = vsub.s32 1, %v59_v39 }
   0xe   :  { %v56_v42 = vld [vmem:[%s934_s2] sm:$0xf]  ;;  %v72_v44 = vsub.s32 3, %v59_v39 }
   0xf   :  { %273 = vmatpush1.bf16.msra.mxu0 %v658_v15  ;;  %354 = vmatpush1.bf16.msra.mxu1 %v659_v16  ;;  %v834_v45 = vrot.slane %v56_v42, %v60_v40  ;;  %v836_v46 = vrot.slane %v56_v42, %v68_v41  ;;  %v838_v47 = vrot.slane %v56_v42, %v64_v43 }
  0x10   :  { %274 = vmatprep.subr.bf16.mxu0 %v660_v17  ;;  %355 = vmatprep.subr.bf16.mxu1 %v662_v18  ;;  %v840_v48 = vrot.slane %v56_v42, %v72_v44 }
  0x13   :  { %275 = vmatpush1.bf16.msra.mxu0 %v664_v19  ;;  %356 = vmatpush1.bf16.msra.mxu1 %v665_v20 }
  0x14   :  { %276 = vmatprep.subr.bf16.mxu0 %v666_v21  ;;  %357 = vmatprep.subr.bf16.mxu1 %v668_v22 }
  0x17   :  { %277 = vmatpush1.bf16.msra.mxu0 %v670_v23  ;;  %358 = vmatpush1.bf16.msra.mxu1 %v671_v24 }
  0x18   :  { %278 = vmatprep.subr.bf16.mxu0 %v672_v25  ;;  %359 = vmatprep.subr.bf16.mxu1 %v674_v26 }
  0x1b   :  { %279 = vmatpush1.bf16.msra.mxu0 %v676_v27  ;;  %360 = vmatpush1.bf16.msra.mxu1 %v677_v28 }
  0x1c   :  { %280 = vmatprep.subr.bf16.mxu0 %v678_v29  ;;  %361 = vmatprep.subr.bf16.mxu1 %v680_v30 }
  0x1f   :  { %281 = vmatpush1.bf16.msra.mxu0 %v682_v31  ;;  %362 = vmatpush1.bf16.msra.mxu1 %v683_v32 }
  0x22   :  { %299 = vmatmul.mubr.bf16.vlgmr.msra.gmra.mrb[0].mxu0 %v684_v33  ;;  %380 = vmatmul.mubr.bf16.vlgmr.msra.gmra.mrb[0].mxu1 %v684_v33 }
  0x23   :  { %308 = vmatprep.mubr.bf16.mxu0 %v689_v1  ;;  %389 = vmatprep.mubr.bf16.mxu1 %v689_v1 }
  0x2a   :  { %309 = vmatmul.mubr.bf16.gmra.mrb[4].mxu0 %v685_v34  ;;  %390 = vmatmul.mubr.bf16.gmra.mrb[4].mxu1 %v685_v34 }
  0x2b   :  { %318 = vmatprep.mubr.bf16.mxu0 %v689_v1  ;;  %399 = vmatprep.mubr.bf16.mxu1 %v689_v1 }
  0x32   :  { %319 = vmatmul.mubr.bf16.gmra.mrb[8].mxu0 %v686_v35  ;;  %400 = vmatmul.mubr.bf16.gmra.mrb[8].mxu1 %v686_v35 }
  0x33   :  { %328 = vmatprep.mubr.bf16.mxu0 %v689_v1  ;;  %409 = vmatprep.mubr.bf16.mxu1 %v689_v1 }
  0x3a   :  { %329 = vmatmul.mubr.bf16.gmra.mrb[12].mxu0 %v687_v36  ;;  %410 = vmatmul.mubr.bf16.gmra.mrb[12].mxu1 %v687_v36 }
  0x3b   :  { %338 = vmatprep.mubr.bf16.mxu0 %v689_v1  ;;  %419 = vmatprep.mubr.bf16.mxu1 %v689_v1 }
  0x42   :  { %339 = vmatmul.mubr.bf16.gmra.mrb[16].mxu0 %v688_v37  ;;  %420 = vmatmul.mubr.bf16.gmra.mrb[16].mxu1 %v688_v37 }
  0xf5   :  { %v300_v49 = vpop.f32.mrb[0].mxu0  ;;  %v381_v50 = vpop.f32.mrb[0].mxu1 }
  0xf6   :  { %v301_v51 = vadd.f32 %v300_v49, %v834_v45  ;;  %v382_v52 = vadd.f32 %v381_v50, %v836_v46  ;;  %v302_v53 = vpop.f32.mrb[1].mxu0  ;;  %v383_v54 = vpop.f32.mrb[1].mxu1 }
  0xf7   :  { %v303_v55 = vadd.f32 %v302_v53, %v838_v47  ;;  %v384_v56 = vadd.f32 %v383_v54, %v840_v48  ;;  %v304_v57 = vpop.f32.mrb[2].mxu0  ;;  %v385_v58 = vpop.f32.mrb[2].mxu1 }
  0xf8   :  { %v305_v59 = vadd.f32 %v304_v57, %v834_v45  ;;  %v386_v60 = vadd.f32 %v385_v58, %v836_v46  ;;  %v306_v61 = vpop.f32.mrb[3].mxu0  ;;  %v387_v62 = vpop.f32.mrb[3].mxu1 }
  0xf9   :  { %v617_v63 = vpack.c.bf16 %v303_v55, %v301_v51  ;;  %v618_v0 = vpack.c.bf16 %v384_v56, %v382_v52  ;;  %v307_v1 = vadd.f32 %v306_v61, %v838_v47  ;;  %v388_v2 = vadd.f32 %v387_v62, %v840_v48 }
  0xfb   :  { %540 = vst [vmem:[%s935_s3] sm:$0xff] %v617_v63  ;;  %541 = vst [vmem:[%s935_s3 + $0x8] sm:$0xff] %v618_v0  ;;  %v619_v3 = vpack.c.bf16 %v307_v1, %v305_v59  ;;  %v620_v4 = vpack.c.bf16 %v388_v2, %v386_v60 }
  0xfd   :  { %542 = vst [vmem:[%s935_s3 + $0x10] sm:$0xff] %v619_v3  ;;  %543 = vst [vmem:[%s935_s3 + $0x18] sm:$0xff] %v620_v4  ;;  %v310_v5 = vpop.f32.mrb[4].mxu0  ;;  %v391_v6 = vpop.f32.mrb[4].mxu1 }
  0xfe   :  { %v311_v7 = vadd.f32 %v310_v5, %v834_v45  ;;  %v392_v8 = vadd.f32 %v391_v6, %v836_v46  ;;  %v312_v9 = vpop.f32.mrb[5].mxu0  ;;  %v393_v10 = vpop.f32.mrb[5].mxu1 }
  0xff   :  { %v313_v11 = vadd.f32 %v312_v9, %v838_v47  ;;  %v394_v12 = vadd.f32 %v393_v10, %v840_v48  ;;  %v314_v13 = vpop.f32.mrb[6].mxu0  ;;  %v395_v14 = vpop.f32.mrb[6].mxu1 }
 0x100   :  { %v315_v15 = vadd.f32 %v314_v13, %v834_v45  ;;  %v396_v16 = vadd.f32 %v395_v14, %v836_v46  ;;  %v316_v17 = vpop.f32.mrb[7].mxu0  ;;  %v397_v18 = vpop.f32.mrb[7].mxu1 }
 0x101   :  { %v621_v19 = vpack.c.bf16 %v313_v11, %v311_v7  ;;  %v622_v20 = vpack.c.bf16 %v394_v12, %v392_v8  ;;  %v317_v21 = vadd.f32 %v316_v17, %v838_v47  ;;  %v398_v22 = vadd.f32 %v397_v18, %v840_v48 }
 0x103   :  { %544 = vst [vmem:[%s935_s3 + $0x20] sm:$0xff] %v621_v19  ;;  %545 = vst [vmem:[%s935_s3 + $0x28] sm:$0xff] %v622_v20  ;;  %v623_v23 = vpack.c.bf16 %v317_v21, %v315_v15  ;;  %v624_v24 = vpack.c.bf16 %v398_v22, %v396_v16 }
 0x105   :  { %546 = vst [vmem:[%s935_s3 + $0x30] sm:$0xff] %v623_v23  ;;  %547 = vst [vmem:[%s935_s3 + $0x38] sm:$0xff] %v624_v24  ;;  %v320_v25 = vpop.f32.mrb[8].mxu0  ;;  %v401_v26 = vpop.f32.mrb[8].mxu1 }
 0x106   :  { %v321_v27 = vadd.f32 %v320_v25, %v834_v45  ;;  %v402_v28 = vadd.f32 %v401_v26, %v836_v46  ;;  %v322_v29 = vpop.f32.mrb[9].mxu0  ;;  %v403_v30 = vpop.f32.mrb[9].mxu1 }
 0x107   :  { %v323_v31 = vadd.f32 %v322_v29, %v838_v47  ;;  %v404_v32 = vadd.f32 %v403_v30, %v840_v48  ;;  %v324_v33 = vpop.f32.mrb[10].mxu0  ;;  %v405_v34 = vpop.f32.mrb[10].mxu1 }
 0x108   :  { %v325_v35 = vadd.f32 %v324_v33, %v834_v45  ;;  %v406_v36 = vadd.f32 %v405_v34, %v836_v46  ;;  %v326_v37 = vpop.f32.mrb[11].mxu0  ;;  %v407_v38 = vpop.f32.mrb[11].mxu1 }
 0x109   :  { %v625_v39 = vpack.c.bf16 %v323_v31, %v321_v27  ;;  %v626_v40 = vpack.c.bf16 %v404_v32, %v402_v28  ;;  %v327_v41 = vadd.f32 %v326_v37, %v838_v47  ;;  %v408_v42 = vadd.f32 %v407_v38, %v840_v48 }
 0x10b   :  { %548 = vst [vmem:[%s935_s3 + $0x40] sm:$0xff] %v625_v39  ;;  %549 = vst [vmem:[%s935_s3 + $0x48] sm:$0xff] %v626_v40  ;;  %v627_v43 = vpack.c.bf16 %v327_v41, %v325_v35  ;;  %v628_v44 = vpack.c.bf16 %v408_v42, %v406_v36 }
 0x10d   :  { %550 = vst [vmem:[%s935_s3 + $0x50] sm:$0xff] %v627_v43  ;;  %551 = vst [vmem:[%s935_s3 + $0x58] sm:$0xff] %v628_v44  ;;  %v330_v49 = vpop.f32.mrb[12].mxu0  ;;  %v411_v50 = vpop.f32.mrb[12].mxu1 }
 0x10e   :  { %v331_v51 = vadd.f32 %v330_v49, %v834_v45  ;;  %v412_v52 = vadd.f32 %v411_v50, %v836_v46  ;;  %v332_v53 = vpop.f32.mrb[13].mxu0  ;;  %v413_v54 = vpop.f32.mrb[13].mxu1 }
 0x10f   :  { %v333_v55 = vadd.f32 %v332_v53, %v838_v47  ;;  %v414_v56 = vadd.f32 %v413_v54, %v840_v48  ;;  %v334_v57 = vpop.f32.mrb[14].mxu0  ;;  %v415_v58 = vpop.f32.mrb[14].mxu1 }
 0x110   :  { %v335_v59 = vadd.f32 %v334_v57, %v834_v45  ;;  %v416_v60 = vadd.f32 %v415_v58, %v836_v46  ;;  %v336_v61 = vpop.f32.mrb[15].mxu0  ;;  %v417_v62 = vpop.f32.mrb[15].mxu1 }
 0x111   :  { %v629_v63 = vpack.c.bf16 %v333_v55, %v331_v51  ;;  %v630_v0 = vpack.c.bf16 %v414_v56, %v412_v52  ;;  %v337_v1 = vadd.f32 %v336_v61, %v838_v47  ;;  %v418_v2 = vadd.f32 %v417_v62, %v840_v48 }
 0x113   :  { %552 = vst [vmem:[%s935_s3 + $0x60] sm:$0xff] %v629_v63  ;;  %553 = vst [vmem:[%s935_s3 + $0x68] sm:$0xff] %v630_v0  ;;  %v631_v3 = vpack.c.bf16 %v337_v1, %v335_v59  ;;  %v632_v4 = vpack.c.bf16 %v418_v2, %v416_v60 }
 0x115   :  { %554 = vst [vmem:[%s935_s3 + $0x70] sm:$0xff] %v631_v3  ;;  %555 = vst [vmem:[%s935_s3 + $0x78] sm:$0xff] %v632_v4  ;;  %v340_v5 = vpop.f32.mrb[16].mxu0  ;;  %v421_v6 = vpop.f32.mrb[16].mxu1 }
 0x116   :  { %v341_v7 = vadd.f32 %v340_v5, %v834_v45  ;;  %v422_v8 = vadd.f32 %v421_v6, %v836_v46  ;;  %v342_v9 = vpop.f32.mrb[17].mxu0  ;;  %v423_v10 = vpop.f32.mrb[17].mxu1 }
 0x117   :  { %v343_v11 = vadd.f32 %v342_v9, %v838_v47  ;;  %v424_v12 = vadd.f32 %v423_v10, %v840_v48  ;;  %v344_v13 = vpop.f32.mrb[18].mxu0  ;;  %v425_v14 = vpop.f32.mrb[18].mxu1 }
 0x118   :  { %v345_v15 = vpop.f32.mrb[19].mxu0  ;;  %v426_v16 = vpop.f32.mrb[19].mxu1 }
 0x119   :  { %v633_v17 = vpack.c.bf16 %v343_v11, %v341_v7  ;;  %v634_v18 = vpack.c.bf16 %v424_v12, %v422_v8 }
 0x11b   :  { %556 = vst [vmem:[%s935_s3 + $0x80] sm:$0xff] %v633_v17  ;;  %557 = vst [vmem:[%s935_s3 + $0x88] sm:$0xff] %v634_v18 }

// kernel: decoder_rnn_forward.4
= control target key start
LH: loop header
LB: loop body
LE: loop exit
PB: predicated region body
PF: predicated region fallthrough
CT: control target
= control target key end

     0   :  { %v3367_v1 = vmov 0   ;;  %v3368_v33 = vmov 0.0|0.0   ;;  %s4183_s1 = inlined_call_operand.vmem [shape: bf16[128,512], index: 1, kind: input, shape index: {}]   ;;  %s4184_s0 = inlined_call_operand.vmem [shape: bf16[9,8,512], index: 0, kind: input, shape index: {}]   ;;  %s4185_s2 = inlined_call_operand.vmem [shape: bf16[9,8,128], index: 2, kind: output, shape index: {}]  }
   0x1   :  { %v3387_v0 = vld [vmem:[%s4183_s1 + $0x4] ss:$16 sps:$4 sm:$0xff]   ;;  %251 = vmatprep.mubr.bf16.mxu0 %v3367_v1  ;;  %292 = vmatprep.mubr.bf16.mxu1 %v3367_v1  ;;  %v3394_v2 = vld [vmem:[%s4183_s1] ss:$16 sps:$4 sm:$0xff]   ;;  %v3406_v4 = vld [vmem:[%s4183_s1 + $0xc] ss:$16 sps:$4 sm:$0xff]  }
   0x2   :  { %219 = vmatprep.subr.bf16.mxu0 %v3387_v0  ;;  %v3400_v3 = vld [vmem:[%s4183_s1 + $0x24] ss:$16 sps:$4 sm:$0xff]   ;;  %v3411_v5 = vld [vmem:[%s4183_s1 + $0x20] ss:$16 sps:$4 sm:$0xff]   ;;  %v3416_v6 = vld [vmem:[%s4183_s1 + $0x8] ss:$16 sps:$4 sm:$0xff]   ;;  %260 = vmatprep.subr.bf16.mxu1 %v3406_v4 }
   0x3   :  { %220 = vmatpush1.bf16.msra.mxu0 %v3394_v2  ;;  %v3422_v7 = vld [vmem:[%s4183_s1 + $0x44] ss:$16 sps:$4 sm:$0xff]   ;;  %v3428_v8 = vld [vmem:[%s4183_s1 + $0x2c] ss:$16 sps:$4 sm:$0xff]   ;;  %261 = vmatpush1.bf16.msra.mxu1 %v3416_v6  ;;  %v3434_v9 = vld [vmem:[%s4183_s1 + $0x28] ss:$16 sps:$4 sm:$0xff]  }
   0x4   :  { %221 = vmatprep.subr.bf16.mxu0 %v3400_v3  ;;  %262 = vmatprep.subr.bf16.mxu1 %v3428_v8  ;;  %v3441_v10 = vld [vmem:[%s4183_s1 + $0x40] ss:$16 sps:$4 sm:$0xff]   ;;  %v3447_v11 = vld [vmem:[%s4183_s1 + $0x64] ss:$16 sps:$4 sm:$0xff]   ;;  %v3452_v12 = vld [vmem:[%s4183_s1 + $0x4c] ss:$16 sps:$4 sm:$0xff]  }
   0x5   :  { %v3458_v13 = vld [vmem:[%s4183_s1 + $0x48] ss:$16 sps:$4 sm:$0xff]   ;;  %v3465_v14 = vld [vmem:[%s4183_s1 + $0x60] ss:$16 sps:$4 sm:$0xff]   ;;  %v3470_v15 = vld [vmem:[%s4183_s1 + $0x6c] ss:$16 sps:$4 sm:$0xff]  }
   0x6   :  { %v3476_v16 = vld [vmem:[%s4183_s1 + $0x84] ss:$16 sps:$4 sm:$0xff]   ;;  %v3482_v17 = vld [vmem:[%s4183_s1 + $0x80] ss:$16 sps:$4 sm:$0xff]   ;;  %v3487_v18 = vld [vmem:[%s4183_s1 + $0x68] ss:$16 sps:$4 sm:$0xff]  }
   0x7   :  { %222 = vmatpush1.bf16.msra.mxu0 %v3411_v5  ;;  %263 = vmatpush1.bf16.msra.mxu1 %v3434_v9  ;;  %v3494_v19 = vld [vmem:[%s4183_s1 + $0x8c] ss:$16 sps:$4 sm:$0xff]   ;;  %v3500_v20 = vld [vmem:[%s4183_s1 + $0xa4] ss:$16 sps:$4 sm:$0xff]   ;;  %v3506_v21 = vld [vmem:[%s4183_s1 + $0x88] ss:$16 sps:$4 sm:$0xff]  }
   0x8   :  { %223 = vmatprep.subr.bf16.mxu0 %v3422_v7  ;;  %264 = vmatprep.subr.bf16.mxu1 %v3452_v12  ;;  %v3513_v22 = vld [vmem:[%s4183_s1 + $0xa0] ss:$16 sps:$4 sm:$0xff]   ;;  %v3518_v23 = vld [vmem:[%s4183_s1 + $0xac] ss:$16 sps:$4 sm:$0xff]   ;;  %v3524_v24 = vld [vmem:[%s4183_s1 + $0xc4] ss:$16 sps:$4 sm:$0xff]  }
   0x9   :  { %v3529_v25 = vld [vmem:[%s4183_s1 + $0xc0] ss:$16 sps:$4 sm:$0xff]   ;;  %v3534_v26 = vld [vmem:[%s4183_s1 + $0xa8] ss:$16 sps:$4 sm:$0xff]   ;;  %v3539_v27 = vld [vmem:[%s4183_s1 + $0xcc] ss:$16 sps:$4 sm:$0xff]  }
   0xa   :  { %v3545_v28 = vld [vmem:[%s4183_s1 + $0xe4] ss:$16 sps:$4 sm:$0xff]   ;;  %v3553_v29 = vld [vmem:[%s4183_s1 + $0xc8] ss:$16 sps:$4 sm:$0xff]   ;;  %v3558_v30 = vld [vmem:[%s4183_s1 + $0xe0] ss:$16 sps:$4 sm:$0xff]  }
   0xb   :  { %224 = vmatpush1.bf16.msra.mxu0 %v3441_v10  ;;  %265 = vmatpush1.bf16.msra.mxu1 %v3458_v13  ;;  %v3563_v31 = vld [vmem:[%s4183_s1 + $0xec] ss:$16 sps:$4 sm:$0xff]   ;;  %v3572_v32 = vld [vmem:[%s4183_s1 + $0xe8] ss:$16 sps:$4 sm:$0xff]   ;;  %v20_v34 = vld [vmem:[%s4184_s0] sm:$0xff] }
   0xc   :  { %225 = vmatprep.subr.bf16.mxu0 %v3447_v11  ;;  %266 = vmatprep.subr.bf16.mxu1 %v3470_v15  ;;  %v22_v35 = vunpack.c.l.bf16 %v20_v34  ;;  %v21_v36 = vld [vmem:[%s4184_s0 + $0x8] sm:$0xff]  ;;  %v23_v37 = vunpack.c.h.bf16 %v20_v34 }
   0xd   :  { %v24_v39 = vunpack.c.l.bf16 %v21_v36  ;;  %v25_v50 = vunpack.c.h.bf16 %v21_v36 }
   0xf   :  { %226 = vmatpush1.bf16.msra.mxu0 %v3465_v14  ;;  %267 = vmatpush1.bf16.msra.mxu1 %v3487_v18 }
  0x10   :  { %227 = vmatprep.subr.bf16.mxu0 %v3476_v16  ;;  %268 = vmatprep.subr.bf16.mxu1 %v3494_v19 }
  0x13   :  { %228 = vmatpush1.bf16.msra.mxu0 %v3482_v17  ;;  %269 = vmatpush1.bf16.msra.mxu1 %v3506_v21 }
  0x14   :  { %229 = vmatprep.subr.bf16.mxu0 %v3500_v20  ;;  %270 = vmatprep.subr.bf16.mxu1 %v3518_v23 }
  0x17   :  { %230 = vmatpush1.bf16.msra.mxu0 %v3513_v22  ;;  %271 = vmatpush1.bf16.msra.mxu1 %v3534_v26 }
  0x18   :  { %231 = vmatprep.subr.bf16.mxu0 %v3524_v24  ;;  %272 = vmatprep.subr.bf16.mxu1 %v3539_v27 }
  0x1b   :  { %232 = vmatpush1.bf16.msra.mxu0 %v3529_v25  ;;  %273 = vmatpush1.bf16.msra.mxu1 %v3553_v29 }
  0x1c   :  { %233 = vmatprep.subr.bf16.mxu0 %v3545_v28  ;;  %274 = vmatprep.subr.bf16.mxu1 %v3563_v31 }
  0x1f   :  { %234 = vmatpush1.bf16.msra.mxu0 %v3558_v30  ;;  %275 = vmatpush1.bf16.msra.mxu1 %v3572_v32 }
  0x20   :  { %529 = vmatprep.subr.bf16.mxu0 %v3387_v0  ;;  %570 = vmatprep.subr.bf16.mxu1 %v3406_v4 }
  0x22   :  { %252 = vmatmul.mubr.bf16.vlgmr.msra.gmra.mrb[0].mxu0 %v3368_v33  ;;  %293 = vmatmul.mubr.bf16.vlgmr.msra.gmra.mrb[0].mxu1 %v3368_v33 }
  0x23   :  { %530 = vmatpush1.bf16.msra.mxu0 %v3394_v2  ;;  %561 = vmatprep.mubr.bf16.mxu0 %v3367_v1 }
  0x24   :  { %531 = vmatprep.subr.bf16.mxu0 %v3400_v3  ;;  %571 = vmatpush1.bf16.msra.mxu1 %v3416_v6 }
  0x25   :  { %602 = vmatprep.mubr.bf16.mxu1 %v3367_v1  ;;  %572 = vmatprep.subr.bf16.mxu1 %v3428_v8 }
  0x27   :  { %532 = vmatpush1.bf16.msra.mxu0 %v3411_v5 }
  0x28   :  { %533 = vmatprep.subr.bf16.mxu0 %v3422_v7  ;;  %573 = vmatpush1.bf16.msra.mxu1 %v3434_v9 }
  0x29   :  { %574 = vmatprep.subr.bf16.mxu1 %v3452_v12 }
  0x2b   :  { %534 = vmatpush1.bf16.msra.mxu0 %v3441_v10 }
  0x2c   :  { %535 = vmatprep.subr.bf16.mxu0 %v3447_v11  ;;  %575 = vmatpush1.bf16.msra.mxu1 %v3458_v13 }
  0x2d   :  { %576 = vmatprep.subr.bf16.mxu1 %v3470_v15 }
  0x2f   :  { %536 = vmatpush1.bf16.msra.mxu0 %v3465_v14 }
  0x30   :  { %537 = vmatprep.subr.bf16.mxu0 %v3476_v16  ;;  %577 = vmatpush1.bf16.msra.mxu1 %v3487_v18 }
  0x31   :  { %578 = vmatprep.subr.bf16.mxu1 %v3494_v19 }
  0x33   :  { %538 = vmatpush1.bf16.msra.mxu0 %v3482_v17 }
  0x34   :  { %539 = vmatprep.subr.bf16.mxu0 %v3500_v20  ;;  %579 = vmatpush1.bf16.msra.mxu1 %v3506_v21 }
  0x35   :  { %580 = vmatprep.subr.bf16.mxu1 %v3518_v23 }
  0x37   :  { %540 = vmatpush1.bf16.msra.mxu0 %v3513_v22 }
  0x38   :  { %541 = vmatprep.subr.bf16.mxu0 %v3524_v24  ;;  %581 = vmatpush1.bf16.msra.mxu1 %v3534_v26 }
  0x39   :  { %582 = vmatprep.subr.bf16.mxu1 %v3539_v27 }
  0x3b   :  { %542 = vmatpush1.bf16.msra.mxu0 %v3529_v25 }
  0x3c   :  { %543 = vmatprep.subr.bf16.mxu0 %v3545_v28  ;;  %583 = vmatpush1.bf16.msra.mxu1 %v3553_v29 }
  0x3d   :  { %584 = vmatprep.subr.bf16.mxu1 %v3563_v31 }
  0x3f   :  { %544 = vmatpush1.bf16.msra.mxu0 %v3558_v30 }
  0x40   :  { %840 = vmatprep.subr.bf16.mxu0 %v3387_v0  ;;  %585 = vmatpush1.bf16.msra.mxu1 %v3572_v32 }
  0x41   :  { %881 = vmatprep.subr.bf16.mxu1 %v3406_v4 }
  0xf5   :  { %v253_v38 = vpop.f32.mrb[0].mxu0  ;;  %v294_v46 = vpop.f32.mrb[0].mxu1 }
  0xf6   :  { %v301_v40 = vadd.f32 %v253_v38, %v22_v35  ;;  %v255_v41 = vpop.f32.mrb[1].mxu0  ;;  %v303_v48 = vadd.f32 %v294_v46, %v24_v39  ;;  %v296_v49 = vpop.f32.mrb[1].mxu1 }
  0xf7   :  { %v302_v42 = vadd.f32 %v255_v41, %v23_v37  ;;  %v257_v43 = vpop.f32.mrb[2].mxu0  ;;  %v298_v51 = vpop.f32.mrb[2].mxu1  ;;  %v304_v53 = vadd.f32 %v296_v49, %v25_v50 }
  0xf8   :  { %v305_v44 = vmul.f32 0.5, %v301_v40  ;;  %v258_v45 = vpop.f32.mrb[3].mxu0  ;;  %v299_v52 = vpop.f32.mrb[3].mxu1  ;;  %v2851_v40 = vld [vmem:[%s4184_s0 + $0x10] sm:$0xff] }
  0xf9   :  { %v309_v47 = vmul.f32 0.5, %v302_v42  ;;  %v314_v54 = vmul.f32 0.5, %v304_v53  ;;  %v332_v41 = vunpack.c.l.bf16 %v2851_v40  ;;  %v2852_v42 = vld [vmem:[%s4184_s0 + $0x18] sm:$0xff]  ;;  %v333_v43 = vunpack.c.h.bf16 %v2851_v40 }
  0xfa   :  { %3277 = vtanh.f32 %v305_v44 }
  0xfb   :  { %3279 = vtanh.f32 %v309_v47  ;;  %v334_v47 = vunpack.c.l.bf16 %v2852_v42 }
  0xfc   :  { %3281 = vtanh.f32 %v303_v48 }
  0xfd   :  { %3283 = vtanh.f32 %v314_v54 }
 0x104   :  { %v3278_v55 = vpop.eup %3277 }
 0x105   :  { %v3280_v56 = vpop.eup %3279  ;;  %v307_v57 = vmul.f32 0.5, %v3278_v55 }
 0x106   :  { %v3282_v58 = vpop.eup %3281  ;;  %v311_v59 = vmul.f32 0.5, %v3280_v56  ;;  %v335_v56 = vunpack.c.h.bf16 %v2852_v42 }
 0x107   :  { %v308_v60 = vadd.f32 0.5, %v307_v57  ;;  %v3284_v34 = vpop.eup %3283 }
 0x108   :  { %v312_v61 = vadd.f32 0.5, %v311_v59  ;;  %v316_v35 = vmul.f32 0.5, %v3284_v34 }
 0x109   :  { %v319_v62 = vmul.f32 %v3282_v58, %v308_v60 }
 0x10a   :  { %v318_v63 = vmul.f32 0.0, %v312_v61  ;;  %v317_v36 = vadd.f32 0.5, %v316_v35 }
 0x10c   :  { %v3620_v33 = vadd.f32 %v319_v62, %v318_v63 }
 0x10e   :  { %3285 = vtanh.f32 %v3620_v33 }
 0x118   :  { %v3286_v37 = vpop.eup %3285 }
 0x119   :  { %v322_v38 = vmul.f32 %v3286_v37, %v317_v36 }
 0x11b   :  { %v325_v39 = vpack.c.bf16 %v322_v38, %v322_v38 }
 0x11d   :  { %326 = vst [vmem:[%s4185_s2] sm:$0xf] %v325_v39  ;;  %562 = vmatmul.mubr.bf16.vlgmr.msra.gmra.mrb[4].mxu0 %v325_v39  ;;  %603 = vmatmul.mubr.bf16.vlgmr.msra.gmra.mrb[4].mxu1 %v325_v39 }
 0x11e   :  { %841 = vmatpush1.bf16.msra.mxu0 %v3394_v2  ;;  %882 = vmatpush1.bf16.msra.mxu1 %v3416_v6 }
 0x11f   :  { %842 = vmatprep.subr.bf16.mxu0 %v3400_v3  ;;  %883 = vmatprep.subr.bf16.mxu1 %v3428_v8 }
 0x120   :  { %872 = vmatprep.mubr.bf16.mxu0 %v3367_v1  ;;  %913 = vmatprep.mubr.bf16.mxu1 %v3367_v1 }
 0x122   :  { %843 = vmatpush1.bf16.msra.mxu0 %v3411_v5  ;;  %884 = vmatpush1.bf16.msra.mxu1 %v3434_v9 }
 0x123   :  { %844 = vmatprep.subr.bf16.mxu0 %v3422_v7  ;;  %885 = vmatprep.subr.bf16.mxu1 %v3452_v12 }
 0x126   :  { %845 = vmatpush1.bf16.msra.mxu0 %v3441_v10  ;;  %886 = vmatpush1.bf16.msra.mxu1 %v3458_v13 }
 0x127   :  { %846 = vmatprep.subr.bf16.mxu0 %v3447_v11  ;;  %887 = vmatprep.subr.bf16.mxu1 %v3470_v15 }
 0x12a   :  { %847 = vmatpush1.bf16.msra.mxu0 %v3465_v14  ;;  %888 = vmatpush1.bf16.msra.mxu1 %v3487_v18 }
 0x12b   :  { %848 = vmatprep.subr.bf16.mxu0 %v3476_v16  ;;  %889 = vmatprep.subr.bf16.mxu1 %v3494_v19 }
 0x12e   :  { %849 = vmatpush1.bf16.msra.mxu0 %v3482_v17  ;;  %890 = vmatpush1.bf16.msra.mxu1 %v3506_v21 }
 0x12f   :  { %850 = vmatprep.subr.bf16.mxu0 %v3500_v20  ;;  %891 = vmatprep.subr.bf16.mxu1 %v3518_v23 }
 0x132   :  { %851 = vmatpush1.bf16.msra.mxu0 %v3513_v22  ;;  %892 = vmatpush1.bf16.msra.mxu1 %v3534_v26 }
 0x133   :  { %852 = vmatprep.subr.bf16.mxu0 %v3524_v24  ;;  %893 = vmatprep.subr.bf16.mxu1 %v3539_v27 }
 0x136   :  { %853 = vmatpush1.bf16.msra.mxu0 %v3529_v25  ;;  %894 = vmatpush1.bf16.msra.mxu1 %v3553_v29 }
 0x137   :  { %854 = vmatprep.subr.bf16.mxu0 %v3545_v28  ;;  %895 = vmatprep.subr.bf16.mxu1 %v3563_v31 }
 0x13a   :  { %855 = vmatpush1.bf16.msra.mxu0 %v3558_v30  ;;  %896 = vmatpush1.bf16.msra.mxu1 %v3572_v32 }
 0x13b   :  { %1151 = vmatprep.subr.bf16.mxu0 %v3387_v0  ;;  %1192 = vmatprep.subr.bf16.mxu1 %v3406_v4 }
 0x1f0   :  { %v563_v44 = vpop.f32.mrb[4].mxu0  ;;  %v604_v45 = vpop.f32.mrb[4].mxu1 }
 0x1f1   :  { %v611_v46 = vadd.f32 %v563_v44, %v332_v41  ;;  %v565_v48 = vpop.f32.mrb[5].mxu0  ;;  %v606_v49 = vpop.f32.mrb[5].mxu1  ;;  %v613_v55 = vadd.f32 %v604_v45, %v334_v47 }
 0x1f2   :  { %v612_v50 = vadd.f32 %v565_v48, %v333_v43  ;;  %v567_v0 = vpop.f32.mrb[6].mxu0  ;;  %v608_v51 = vpop.f32.mrb[6].mxu1  ;;  %v614_v57 = vadd.f32 %v606_v49, %v335_v56  ;;  %v3762_v56 = vld [vmem:[%s4183_s1 + $0x28] ss:$16 sps:$4 sm:$0xff]  }
 0x1f3   :  { %v615_v4 = vmul.f32 0.5, %v611_v46  ;;  %v568_v52 = vpop.f32.mrb[7].mxu0  ;;  %v609_v53 = vpop.f32.mrb[7].mxu1  ;;  %v3723_v0 = vld [vmem:[%s4183_s1 + $0x4] ss:$16 sps:$4 sm:$0xff]  }
 0x1f4   :  { %v619_v54 = vmul.f32 0.5, %v612_v50  ;;  %v624_v58 = vmul.f32 0.5, %v614_v57  ;;  %v3728_v51 = vld [vmem:[%s4183_s1 + $0xc] ss:$16 sps:$4 sm:$0xff]   ;;  %v3738_v52 = vld [vmem:[%s4183_s1 + $0x8] ss:$16 sps:$4 sm:$0xff]  }
 0x1f5   :  { %3287 = vtanh.f32 %v615_v4  ;;  %v3733_v4 = vld [vmem:[%s4183_s1] ss:$16 sps:$4 sm:$0xff]   ;;  %v3747_v53 = vld [vmem:[%s4183_s1 + $0x24] ss:$16 sps:$4 sm:$0xff]  }
 0x1f6   :  { %3289 = vtanh.f32 %v619_v54  ;;  %v3752_v54 = vld [vmem:[%s4183_s1 + $0x2c] ss:$16 sps:$4 sm:$0xff]   ;;  %v3771_v57 = vld [vmem:[%s4183_s1 + $0x44] ss:$16 sps:$4 sm:$0xff]  }
 0x1f7   :  { %3291 = vtanh.f32 %v613_v55  ;;  %v3757_v55 = vld [vmem:[%s4183_s1 + $0x20] ss:$16 sps:$4 sm:$0xff]  }
 0x1f8   :  { %3293 = vtanh.f32 %v624_v58  ;;  %v3776_v58 = vld [vmem:[%s4183_s1 + $0x4c] ss:$16 sps:$4 sm:$0xff]  }
 0x1ff   :  { %v3288_v59 = vpop.eup %3287 }
 0x200   :  { %v3290_v60 = vpop.eup %3289  ;;  %v617_v61 = vmul.f32 0.5, %v3288_v59  ;;  %v3781_v59 = vld [vmem:[%s4183_s1 + $0x40] ss:$16 sps:$4 sm:$0xff]  }
 0x201   :  { %v621_v62 = vmul.f32 0.5, %v3290_v60  ;;  %v3292_v34 = vpop.eup %3291  ;;  %v3786_v60 = vld [vmem:[%s4183_s1 + $0x48] ss:$16 sps:$4 sm:$0xff]  }
 0x202   :  { %v618_v63 = vadd.f32 0.5, %v617_v61  ;;  %v3294_v39 = vpop.eup %3293  ;;  %v3795_v61 = vld [vmem:[%s4183_s1 + $0x64] ss:$16 sps:$4 sm:$0xff]  }
 0x203   :  { %v622_v35 = vadd.f32 0.5, %v621_v62  ;;  %v626_v40 = vmul.f32 0.5, %v3294_v39  ;;  %v3800_v62 = vld [vmem:[%s4183_s1 + $0x6c] ss:$16 sps:$4 sm:$0xff]   ;;  %v3843_v39 = vld [vmem:[%s4183_s1 + $0xa4] ss:$16 sps:$4 sm:$0xff]  }
 0x204   :  { %v629_v36 = vmul.f32 %v3292_v34, %v618_v63  ;;  %v3805_v63 = vld [vmem:[%s4183_s1 + $0x60] ss:$16 sps:$4 sm:$0xff]   ;;  %v3810_v34 = vld [vmem:[%s4183_s1 + $0x68] ss:$16 sps:$4 sm:$0xff]  }
 0x205   :  { %v628_v37 = vmul.f32 %v622_v35, %v3620_v33  ;;  %v627_v41 = vadd.f32 0.5, %v626_v40  ;;  %v3819_v35 = vld [vmem:[%s4183_s1 + $0x84] ss:$16 sps:$4 sm:$0xff]   ;;  %v3848_v40 = vld [vmem:[%s4183_s1 + $0xac] ss:$16 sps:$4 sm:$0xff]  }
 0x207   :  { %v3667_v38 = vadd.f32 %v629_v36, %v628_v37  ;;  %v3824_v36 = vld [vmem:[%s4183_s1 + $0x8c] ss:$16 sps:$4 sm:$0xff]   ;;  %v3829_v37 = vld [vmem:[%s4183_s1 + $0x80] ss:$16 sps:$4 sm:$0xff]  }
 0x209   :  { %3295 = vtanh.f32 %v3667_v38 }
 0x213   :  { %v3296_v42 = vpop.eup %3295 }
 0x214   :  { %v632_v43 = vmul.f32 %v3296_v42, %v627_v41  ;;  %v3853_v41 = vld [vmem:[%s4183_s1 + $0xa0] ss:$16 sps:$4 sm:$0xff]   ;;  %v3858_v42 = vld [vmem:[%s4183_s1 + $0xa8] ss:$16 sps:$4 sm:$0xff]  }
 0x216   :  { %v635_v44 = vpack.c.bf16 %v632_v43, %v632_v43  ;;  %v3867_v43 = vld [vmem:[%s4183_s1 + $0xc4] ss:$16 sps:$4 sm:$0xff]  }
 0x218   :  { %2885 = vst [vmem:[%s4185_s2 + $0x4] sm:$0xf] %v635_v44  ;;  %873 = vmatmul.mubr.bf16.vlgmr.msra.gmra.mrb[8].mxu0 %v635_v44  ;;  %914 = vmatmul.mubr.bf16.vlgmr.msra.gmra.mrb[8].mxu1 %v635_v44  ;;  %v3872_v44 = vld [vmem:[%s4183_s1 + $0xcc] ss:$16 sps:$4 sm:$0xff]  }
 0x219   :  { %1152 = vmatpush1.bf16.msra.mxu0 %v3394_v2  ;;  %1193 = vmatpush1.bf16.msra.mxu1 %v3416_v6  ;;  %v2886_v2 = vld [vmem:[%s4184_s0 + $0x20] sm:$0xff] }
 0x21a   :  { %1153 = vmatprep.subr.bf16.mxu0 %v3400_v3  ;;  %1194 = vmatprep.subr.bf16.mxu1 %v3428_v8  ;;  %v643_v3 = vunpack.c.l.bf16 %v2886_v2  ;;  %v644_v6 = vunpack.c.h.bf16 %v2886_v2  ;;  %v3877_v2 = vld [vmem:[%s4183_s1 + $0xc0] ss:$16 sps:$4 sm:$0xff]  }
 0x21b   :  { %1183 = vmatprep.mubr.bf16.mxu0 %v3367_v1  ;;  %1224 = vmatprep.mubr.bf16.mxu1 %v3367_v1 }
 0x21d   :  { %1154 = vmatpush1.bf16.msra.mxu0 %v3411_v5  ;;  %1195 = vmatpush1.bf16.msra.mxu1 %v3434_v9  ;;  %v2887_v5 = vld [vmem:[%s4184_s0 + $0x28] sm:$0xff] }
 0x21e   :  { %1155 = vmatprep.subr.bf16.mxu0 %v3422_v7  ;;  %1196 = vmatprep.subr.bf16.mxu1 %v3452_v12 }
 0x221   :  { %1156 = vmatpush1.bf16.msra.mxu0 %v3441_v10  ;;  %1197 = vmatpush1.bf16.msra.mxu1 %v3458_v13  ;;  %v645_v10 = vunpack.c.l.bf16 %v2887_v5 }
 0x222   :  { %1157 = vmatprep.subr.bf16.mxu0 %v3447_v11  ;;  %1198 = vmatprep.subr.bf16.mxu1 %v3470_v15 }
 0x225   :  { %1158 = vmatpush1.bf16.msra.mxu0 %v3465_v14  ;;  %1199 = vmatpush1.bf16.msra.mxu1 %v3487_v18 }
 0x226   :  { %1159 = vmatprep.subr.bf16.mxu0 %v3476_v16  ;;  %1200 = vmatprep.subr.bf16.mxu1 %v3494_v19 }
 0x229   :  { %1160 = vmatpush1.bf16.msra.mxu0 %v3482_v17  ;;  %1201 = vmatpush1.bf16.msra.mxu1 %v3506_v21  ;;  %v646_v21 = vunpack.c.h.bf16 %v2887_v5  ;;  %v3891_v5 = vld [vmem:[%s4183_s1 + $0xe4] ss:$16 sps:$4 sm:$0xff]  }
 0x22a   :  { %1161 = vmatprep.subr.bf16.mxu0 %v3500_v20  ;;  %1202 = vmatprep.subr.bf16.mxu1 %v3518_v23 }
 0x22d   :  { %1162 = vmatpush1.bf16.msra.mxu0 %v3513_v22  ;;  %1203 = vmatpush1.bf16.msra.mxu1 %v3534_v26 }
 0x22e   :  { %1163 = vmatprep.subr.bf16.mxu0 %v3524_v24  ;;  %1204 = vmatprep.subr.bf16.mxu1 %v3539_v27 }
 0x231   :  { %1164 = vmatpush1.bf16.msra.mxu0 %v3529_v25  ;;  %1205 = vmatpush1.bf16.msra.mxu1 %v3553_v29 }
 0x232   :  { %1165 = vmatprep.subr.bf16.mxu0 %v3545_v28  ;;  %1206 = vmatprep.subr.bf16.mxu1 %v3563_v31 }
 0x235   :  { %1166 = vmatpush1.bf16.msra.mxu0 %v3558_v30  ;;  %1207 = vmatpush1.bf16.msra.mxu1 %v3572_v32 }
 0x236   :  { %1462 = vmatprep.subr.bf16.mxu0 %v3723_v0  ;;  %1503 = vmatprep.subr.bf16.mxu1 %v3728_v51 }
 0x2eb   :  { %v874_v7 = vpop.f32.mrb[8].mxu0  ;;  %v915_v8 = vpop.f32.mrb[8].mxu1 }
 0x2ec   :  { %v922_v9 = vadd.f32 %v874_v7, %v643_v3  ;;  %v876_v11 = vpop.f32.mrb[9].mxu0  ;;  %v917_v12 = vpop.f32.mrb[9].mxu1  ;;  %v924_v20 = vadd.f32 %v915_v8, %v645_v10  ;;  %v3882_v3 = vld [vmem:[%s4183_s1 + $0xc8] ss:$16 sps:$4 sm:$0xff]   ;;  %v3901_v7 = vld [vmem:[%s4183_s1 + $0xe0] ss:$16 sps:$4 sm:$0xff]  }
 0x2ed   :  { %v923_v13 = vadd.f32 %v876_v11, %v644_v6  ;;  %v878_v14 = vpop.f32.mrb[10].mxu0  ;;  %v919_v15 = vpop.f32.mrb[10].mxu1  ;;  %v925_v22 = vadd.f32 %v917_v12, %v646_v21  ;;  %v3896_v6 = vld [vmem:[%s4183_s1 + $0xec] ss:$16 sps:$4 sm:$0xff]   ;;  %v3906_v8 = vld [vmem:[%s4183_s1 + $0xe8] ss:$16 sps:$4 sm:$0xff]  }
 0x2ee   :  { %v926_v16 = vmul.f32 0.5, %v922_v9  ;;  %v879_v17 = vpop.f32.mrb[11].mxu0  ;;  %v920_v18 = vpop.f32.mrb[11].mxu1  ;;  %v2921_v9 = vld [vmem:[%s4184_s0 + $0x30] sm:$0xff]  ;;  %v2922_v11 = vld [vmem:[%s4184_s0 + $0x38] sm:$0xff] }
 0x2ef   :  { %v930_v19 = vmul.f32 0.5, %v923_v13  ;;  %v935_v23 = vmul.f32 0.5, %v925_v22  ;;  %v954_v10 = vunpack.c.l.bf16 %v2921_v9  ;;  %v955_v12 = vunpack.c.h.bf16 %v2921_v9 }
 0x2f0   :  { %3297 = vtanh.f32 %v926_v16  ;;  %v956_v16 = vunpack.c.l.bf16 %v2922_v11 }
 0x2f1   :  { %3299 = vtanh.f32 %v930_v19 }
 0x2f2   :  { %3301 = vtanh.f32 %v924_v20 }
 0x2f3   :  { %3303 = vtanh.f32 %v935_v23 }
 0x2fa   :  { %v3298_v24 = vpop.eup %3297 }
 0x2fb   :  { %v3300_v25 = vpop.eup %3299  ;;  %v928_v26 = vmul.f32 0.5, %v3298_v24 }
 0x2fc   :  { %v932_v27 = vmul.f32 0.5, %v3300_v25  ;;  %v3302_v29 = vpop.eup %3301 }
 0x2fd   :  { %v929_v28 = vadd.f32 0.5, %v928_v26  ;;  %v3304_v45 = vpop.eup %3303 }
 0x2fe   :  { %v933_v30 = vadd.f32 0.5, %v932_v27  ;;  %v937_v46 = vmul.f32 0.5, %v3304_v45  ;;  %v957_v27 = vunpack.c.h.bf16 %v2922_v11 }
 0x2ff   :  { %v940_v31 = vmul.f32 %v3302_v29, %v929_v28 }
 0x300   :  { %v939_v32 = vmul.f32 %v933_v30, %v3667_v38  ;;  %v938_v47 = vadd.f32 0.5, %v937_v46  ;;  %v3834_v38 = vld [vmem:[%s4183_s1 + $0x88] ss:$16 sps:$4 sm:$0xff]  }
 0x302   :  { %v3712_v33 = vadd.f32 %v940_v31, %v939_v32 }
 0x304   :  { %3305 = vtanh.f32 %v3712_v33 }
 0x30e   :  { %v3306_v48 = vpop.eup %3305 }
 0x30f   :  { %v943_v49 = vmul.f32 %v3306_v48, %v938_v47 }
 0x311   :  { %v946_v50 = vpack.c.bf16 %v943_v49, %v943_v49 }
 0x313   :  { %2920 = vst [vmem:[%s4185_s2 + $0x8] sm:$0xf] %v946_v50  ;;  %1184 = vmatmul.mubr.bf16.vlgmr.msra.gmra.mrb[12].mxu0 %v946_v50  ;;  %1225 = vmatmul.mubr.bf16.vlgmr.msra.gmra.mrb[12].mxu1 %v946_v50 }
 0x314   :  { %1494 = vmatprep.mubr.bf16.mxu0 %v3367_v1  ;;  %1535 = vmatprep.mubr.bf16.mxu1 %v3367_v1 }
 0x315   :  { %1463 = vmatpush1.bf16.msra.mxu0 %v3733_v4  ;;  %1504 = vmatpush1.bf16.msra.mxu1 %v3738_v52 }
 0x316   :  { %1464 = vmatprep.subr.bf16.mxu0 %v3747_v53  ;;  %1505 = vmatprep.subr.bf16.mxu1 %v3752_v54 }
 0x319   :  { %1465 = vmatpush1.bf16.msra.mxu0 %v3757_v55  ;;  %1506 = vmatpush1.bf16.msra.mxu1 %v3762_v56 }
 0x31a   :  { %1466 = vmatprep.subr.bf16.mxu0 %v3771_v57  ;;  %1507 = vmatprep.subr.bf16.mxu1 %v3776_v58 }
 0x31d   :  { %1467 = vmatpush1.bf16.msra.mxu0 %v3781_v59  ;;  %1508 = vmatpush1.bf16.msra.mxu1 %v3786_v60 }
 0x31e   :  { %1468 = vmatprep.subr.bf16.mxu0 %v3795_v61  ;;  %1509 = vmatprep.subr.bf16.mxu1 %v3800_v62 }
 0x321   :  { %1469 = vmatpush1.bf16.msra.mxu0 %v3805_v63  ;;  %1510 = vmatpush1.bf16.msra.mxu1 %v3810_v34 }
 0x322   :  { %1470 = vmatprep.subr.bf16.mxu0 %v3819_v35  ;;  %1511 = vmatprep.subr.bf16.mxu1 %v3824_v36 }
 0x325   :  { %1471 = vmatpush1.bf16.msra.mxu0 %v3829_v37  ;;  %1512 = vmatpush1.bf16.msra.mxu1 %v3834_v38 }
 0x326   :  { %1472 = vmatprep.subr.bf16.mxu0 %v3843_v39  ;;  %1513 = vmatprep.subr.bf16.mxu1 %v3848_v40 }
 0x329   :  { %1473 = vmatpush1.bf16.msra.mxu0 %v3853_v41  ;;  %1514 = vmatpush1.bf16.msra.mxu1 %v3858_v42 }
 0x32a   :  { %1474 = vmatprep.subr.bf16.mxu0 %v3867_v43  ;;  %1515 = vmatprep.subr.bf16.mxu1 %v3872_v44 }
 0x32d   :  { %1475 = vmatpush1.bf16.msra.mxu0 %v3877_v2  ;;  %1516 = vmatpush1.bf16.msra.mxu1 %v3882_v3 }
 0x32e   :  { %1476 = vmatprep.subr.bf16.mxu0 %v3891_v5  ;;  %1517 = vmatprep.subr.bf16.mxu1 %v3896_v6 }
 0x331   :  { %1477 = vmatpush1.bf16.msra.mxu0 %v3901_v7  ;;  %1518 = vmatpush1.bf16.msra.mxu1 %v3906_v8 }
 0x332   :  { %1773 = vmatprep.subr.bf16.mxu0 %v3723_v0  ;;  %1814 = vmatprep.subr.bf16.mxu1 %v3728_v51 }
 0x3e6   :  { %v1185_v13 = vpop.f32.mrb[12].mxu0  ;;  %v1226_v14 = vpop.f32.mrb[12].mxu1 }
 0x3e7   :  { %v1233_v15 = vadd.f32 %v1185_v13, %v954_v10  ;;  %v1187_v17 = vpop.f32.mrb[13].mxu0  ;;  %v1228_v18 = vpop.f32.mrb[13].mxu1  ;;  %v1235_v26 = vadd.f32 %v1226_v14, %v956_v16 }
 0x3e8   :  { %v1234_v19 = vadd.f32 %v1187_v17, %v955_v12  ;;  %v1189_v20 = vpop.f32.mrb[14].mxu0  ;;  %v1230_v21 = vpop.f32.mrb[14].mxu1  ;;  %v1236_v28 = vadd.f32 %v1228_v18, %v957_v27  ;;  %v2957_v17 = vld [vmem:[%s4184_s0 + $0x48] sm:$0xff] }
 0x3e9   :  { %v1237_v22 = vmul.f32 0.5, %v1233_v15  ;;  %v1190_v23 = vpop.f32.mrb[15].mxu0  ;;  %v1231_v24 = vpop.f32.mrb[15].mxu1 }
 0x3ea   :  { %v1241_v25 = vmul.f32 0.5, %v1234_v19  ;;  %v1246_v29 = vmul.f32 0.5, %v1236_v28 }
 0x3eb   :  { %3307 = vtanh.f32 %v1237_v22  ;;  %v1267_v22 = vunpack.c.l.bf16 %v2957_v17 }
 0x3ec   :  { %3309 = vtanh.f32 %v1241_v25 }
 0x3ed   :  { %3311 = vtanh.f32 %v1235_v26 }
 0x3ee   :  { %3313 = vtanh.f32 %v1246_v29 }
 0x3f5   :  { %v3308_v30 = vpop.eup %3307 }
 0x3f6   :  { %v3310_v31 = vpop.eup %3309  ;;  %v1239_v32 = vmul.f32 0.5, %v3308_v30 }
 0x3f7   :  { %v1243_v45 = vmul.f32 0.5, %v3310_v31  ;;  %v3312_v47 = vpop.eup %3311 }
 0x3f8   :  { %v1240_v46 = vadd.f32 0.5, %v1239_v32  ;;  %v3314_v10 = vpop.eup %3313 }
 0x3f9   :  { %v1244_v48 = vadd.f32 0.5, %v1243_v45  ;;  %v1248_v11 = vmul.f32 0.5, %v3314_v10  ;;  %v1268_v45 = vunpack.c.h.bf16 %v2957_v17 }
 0x3fa   :  { %v1251_v49 = vmul.f32 %v3312_v47, %v1240_v46 }
 0x3fb   :  { %v1250_v50 = vmul.f32 %v1244_v48, %v3712_v33  ;;  %v1249_v12 = vadd.f32 0.5, %v1248_v11  ;;  %v2956_v33 = vld [vmem:[%s4184_s0 + $0x40] sm:$0xff] }
 0x3fc   :  { %v1265_v16 = vunpack.c.l.bf16 %v2956_v33  ;;  %v1266_v18 = vunpack.c.h.bf16 %v2956_v33 }
 0x3fd   :  { %v3921_v9 = vadd.f32 %v1251_v49, %v1250_v50 }
 0x3ff   :  { %3315 = vtanh.f32 %v3921_v9 }
 0x409   :  { %v3316_v13 = vpop.eup %3315 }
 0x40a   :  { %v1254_v14 = vmul.f32 %v3316_v13, %v1249_v12 }
 0x40c   :  { %v1257_v15 = vpack.c.bf16 %v1254_v14, %v1254_v14 }
 0x40e   :  { %2955 = vst [vmem:[%s4185_s2 + $0xc] sm:$0xf] %v1257_v15  ;;  %1495 = vmatmul.mubr.bf16.vlgmr.msra.gmra.mrb[16].mxu0 %v1257_v15  ;;  %1536 = vmatmul.mubr.bf16.vlgmr.msra.gmra.mrb[16].mxu1 %v1257_v15 }
 0x40f   :  { %1774 = vmatpush1.bf16.msra.mxu0 %v3733_v4  ;;  %1815 = vmatpush1.bf16.msra.mxu1 %v3738_v52 }
 0x410   :  { %1775 = vmatprep.subr.bf16.mxu0 %v3747_v53  ;;  %1816 = vmatprep.subr.bf16.mxu1 %v3752_v54 }
 0x411   :  { %1805 = vmatprep.mubr.bf16.mxu0 %v3367_v1  ;;  %1846 = vmatprep.mubr.bf16.mxu1 %v3367_v1 }
 0x413   :  { %1776 = vmatpush1.bf16.msra.mxu0 %v3757_v55  ;;  %1817 = vmatpush1.bf16.msra.mxu1 %v3762_v56 }
 0x414   :  { %1777 = vmatprep.subr.bf16.mxu0 %v3771_v57  ;;  %1818 = vmatprep.subr.bf16.mxu1 %v3776_v58 }
 0x417   :  { %1778 = vmatpush1.bf16.msra.mxu0 %v3781_v59  ;;  %1819 = vmatpush1.bf16.msra.mxu1 %v3786_v60 }
 0x418   :  { %1779 = vmatprep.subr.bf16.mxu0 %v3795_v61  ;;  %1820 = vmatprep.subr.bf16.mxu1 %v3800_v62 }
 0x41b   :  { %1780 = vmatpush1.bf16.msra.mxu0 %v3805_v63  ;;  %1821 = vmatpush1.bf16.msra.mxu1 %v3810_v34 }
 0x41c   :  { %1781 = vmatprep.subr.bf16.mxu0 %v3819_v35  ;;  %1822 = vmatprep.subr.bf16.mxu1 %v3824_v36 }
 0x41f   :  { %1782 = vmatpush1.bf16.msra.mxu0 %v3829_v37  ;;  %1823 = vmatpush1.bf16.msra.mxu1 %v3834_v38 }
 0x420   :  { %1783 = vmatprep.subr.bf16.mxu0 %v3843_v39  ;;  %1824 = vmatprep.subr.bf16.mxu1 %v3848_v40 }
 0x423   :  { %1784 = vmatpush1.bf16.msra.mxu0 %v3853_v41  ;;  %1825 = vmatpush1.bf16.msra.mxu1 %v3858_v42 }
 0x424   :  { %1785 = vmatprep.subr.bf16.mxu0 %v3867_v43  ;;  %1826 = vmatprep.subr.bf16.mxu1 %v3872_v44 }
 0x427   :  { %1786 = vmatpush1.bf16.msra.mxu0 %v3877_v2  ;;  %1827 = vmatpush1.bf16.msra.mxu1 %v3882_v3 }
 0x428   :  { %1787 = vmatprep.subr.bf16.mxu0 %v3891_v5  ;;  %1828 = vmatprep.subr.bf16.mxu1 %v3896_v6 }
 0x42b   :  { %1788 = vmatpush1.bf16.msra.mxu0 %v3901_v7  ;;  %1829 = vmatpush1.bf16.msra.mxu1 %v3906_v8 }
 0x42c   :  { %2084 = vmatprep.subr.bf16.mxu0 %v3723_v0  ;;  %2125 = vmatprep.subr.bf16.mxu1 %v3728_v51 }
 0x4e1   :  { %v1496_v19 = vpop.f32.mrb[16].mxu0  ;;  %v1537_v20 = vpop.f32.mrb[16].mxu1 }
 0x4e2   :  { %v1544_v21 = vadd.f32 %v1496_v19, %v1265_v16  ;;  %v1498_v23 = vpop.f32.mrb[17].mxu0  ;;  %v1539_v24 = vpop.f32.mrb[17].mxu1  ;;  %v1546_v32 = vadd.f32 %v1537_v20, %v1267_v22 }
 0x4e3   :  { %v1545_v25 = vadd.f32 %v1498_v23, %v1266_v18  ;;  %v1500_v26 = vpop.f32.mrb[18].mxu0  ;;  %v1541_v27 = vpop.f32.mrb[18].mxu1  ;;  %v1547_v46 = vadd.f32 %v1539_v24, %v1268_v45  ;;  %v2992_v23 = vld [vmem:[%s4184_s0 + $0x58] sm:$0xff] }
 0x4e4   :  { %v1548_v28 = vmul.f32 0.5, %v1544_v21  ;;  %v1501_v29 = vpop.f32.mrb[19].mxu0  ;;  %v1542_v30 = vpop.f32.mrb[19].mxu1 }
 0x4e5   :  { %v1552_v31 = vmul.f32 0.5, %v1545_v25  ;;  %v1557_v47 = vmul.f32 0.5, %v1547_v46 }
 0x4e6   :  { %3317 = vtanh.f32 %v1548_v28  ;;  %v1578_v28 = vunpack.c.l.bf16 %v2992_v23 }
 0x4e7   :  { %3319 = vtanh.f32 %v1552_v31 }
 0x4e8   :  { %3321 = vtanh.f32 %v1546_v32 }
 0x4e9   :  { %3323 = vtanh.f32 %v1557_v47 }
 0x4f0   :  { %v3318_v48 = vpop.eup %3317 }
 0x4f1   :  { %v3320_v49 = vpop.eup %3319  ;;  %v1550_v50 = vmul.f32 0.5, %v3318_v48 }
 0x4f2   :  { %v1554_v10 = vmul.f32 0.5, %v3320_v49  ;;  %v3322_v12 = vpop.eup %3321  ;;  %v1579_v49 = vunpack.c.h.bf16 %v2992_v23 }
 0x4f3   :  { %v1551_v11 = vadd.f32 0.5, %v1550_v50  ;;  %v3324_v16 = vpop.eup %3323 }
 0x4f4   :  { %v1555_v13 = vadd.f32 0.5, %v1554_v10  ;;  %v1559_v17 = vmul.f32 0.5, %v3324_v16 }
 0x4f5   :  { %v1562_v14 = vmul.f32 %v3322_v12, %v1551_v11 }
 0x4f6   :  { %v1561_v15 = vmul.f32 %v1555_v13, %v3921_v9  ;;  %v1560_v18 = vadd.f32 0.5, %v1559_v17  ;;  %v2991_v9 = vld [vmem:[%s4184_s0 + $0x50] sm:$0xff] }
 0x4f7   :  { %v1576_v22 = vunpack.c.l.bf16 %v2991_v9  ;;  %v1577_v24 = vunpack.c.h.bf16 %v2991_v9 }
 0x4f8   :  { %v3968_v33 = vadd.f32 %v1562_v14, %v1561_v15 }
 0x4fa   :  { %3325 = vtanh.f32 %v3968_v33 }
 0x504   :  { %v3326_v19 = vpop.eup %3325 }
 0x505   :  { %v1565_v20 = vmul.f32 %v3326_v19, %v1560_v18 }
 0x507   :  { %v1568_v21 = vpack.c.bf16 %v1565_v20, %v1565_v20 }
 0x509   :  { %2990 = vst [vmem:[%s4185_s2 + $0x10] sm:$0xf] %v1568_v21  ;;  %1806 = vmatmul.mubr.bf16.vlgmr.msra.gmra.mrb[20].mxu0 %v1568_v21  ;;  %1847 = vmatmul.mubr.bf16.vlgmr.msra.gmra.mrb[20].mxu1 %v1568_v21 }
 0x50a   :  { %2085 = vmatpush1.bf16.msra.mxu0 %v3733_v4  ;;  %2126 = vmatpush1.bf16.msra.mxu1 %v3738_v52 }
 0x50b   :  { %2086 = vmatprep.subr.bf16.mxu0 %v3747_v53  ;;  %2127 = vmatprep.subr.bf16.mxu1 %v3752_v54 }
 0x50c   :  { %2116 = vmatprep.mubr.bf16.mxu0 %v3367_v1  ;;  %2157 = vmatprep.mubr.bf16.mxu1 %v3367_v1 }
 0x50e   :  { %2087 = vmatpush1.bf16.msra.mxu0 %v3757_v55  ;;  %2128 = vmatpush1.bf16.msra.mxu1 %v3762_v56 }
 0x50f   :  { %2088 = vmatprep.subr.bf16.mxu0 %v3771_v57  ;;  %2129 = vmatprep.subr.bf16.mxu1 %v3776_v58 }
 0x512   :  { %2089 = vmatpush1.bf16.msra.mxu0 %v3781_v59  ;;  %2130 = vmatpush1.bf16.msra.mxu1 %v3786_v60 }
 0x513   :  { %2090 = vmatprep.subr.bf16.mxu0 %v3795_v61  ;;  %2131 = vmatprep.subr.bf16.mxu1 %v3800_v62 }
 0x516   :  { %2091 = vmatpush1.bf16.msra.mxu0 %v3805_v63  ;;  %2132 = vmatpush1.bf16.msra.mxu1 %v3810_v34 }
 0x517   :  { %2092 = vmatprep.subr.bf16.mxu0 %v3819_v35  ;;  %2133 = vmatprep.subr.bf16.mxu1 %v3824_v36 }
 0x51a   :  { %2093 = vmatpush1.bf16.msra.mxu0 %v3829_v37  ;;  %2134 = vmatpush1.bf16.msra.mxu1 %v3834_v38 }
 0x51b   :  { %2094 = vmatprep.subr.bf16.mxu0 %v3843_v39  ;;  %2135 = vmatprep.subr.bf16.mxu1 %v3848_v40 }
 0x51e   :  { %2095 = vmatpush1.bf16.msra.mxu0 %v3853_v41  ;;  %2136 = vmatpush1.bf16.msra.mxu1 %v3858_v42 }
 0x51f   :  { %2096 = vmatprep.subr.bf16.mxu0 %v3867_v43  ;;  %2137 = vmatprep.subr.bf16.mxu1 %v3872_v44 }
 0x522   :  { %2097 = vmatpush1.bf16.msra.mxu0 %v3877_v2  ;;  %2138 = vmatpush1.bf16.msra.mxu1 %v3882_v3 }
 0x523   :  { %2098 = vmatprep.subr.bf16.mxu0 %v3891_v5  ;;  %2139 = vmatprep.subr.bf16.mxu1 %v3896_v6 }
 0x526   :  { %2099 = vmatpush1.bf16.msra.mxu0 %v3901_v7  ;;  %2140 = vmatpush1.bf16.msra.mxu1 %v3906_v8 }
 0x527   :  { %2395 = vmatprep.subr.bf16.mxu0 %v3723_v0  ;;  %2436 = vmatprep.subr.bf16.mxu1 %v3728_v51 }
 0x5dc   :  { %v1807_v25 = vpop.f32.mrb[20].mxu0  ;;  %v1848_v26 = vpop.f32.mrb[20].mxu1 }
 0x5dd   :  { %v1855_v27 = vadd.f32 %v1807_v25, %v1576_v22  ;;  %v1809_v29 = vpop.f32.mrb[21].mxu0  ;;  %v1850_v30 = vpop.f32.mrb[21].mxu1  ;;  %v1857_v48 = vadd.f32 %v1848_v26, %v1578_v28 }
 0x5de   :  { %v1856_v31 = vadd.f32 %v1809_v29, %v1577_v24  ;;  %v1811_v0 = vpop.f32.mrb[22].mxu0  ;;  %v1852_v32 = vpop.f32.mrb[22].mxu1  ;;  %v1858_v50 = vadd.f32 %v1850_v30, %v1579_v49  ;;  %v3243_v49 = vld [vmem:[%s4183_s1 + $0x44] ss:$16 sps:$4 sm:$0xff]  }
 0x5df   :  { %v1859_v51 = vmul.f32 0.5, %v1855_v27  ;;  %v1812_v45 = vpop.f32.mrb[23].mxu0  ;;  %v1853_v46 = vpop.f32.mrb[23].mxu1  ;;  %v3231_v0 = vld [vmem:[%s4183_s1 + $0x4] ss:$16 sps:$4 sm:$0xff]  }
 0x5e0   :  { %v1863_v47 = vmul.f32 0.5, %v1856_v31  ;;  %v1868_v10 = vmul.f32 0.5, %v1858_v50  ;;  %v3234_v32 = vld [vmem:[%s4183_s1 + $0xc] ss:$16 sps:$4 sm:$0xff]   ;;  %v3232_v45 = vld [vmem:[%s4183_s1 + $0x8] ss:$16 sps:$4 sm:$0xff]  }
 0x5e1   :  { %3327 = vtanh.f32 %v1859_v51  ;;  %v3229_v51 = vld [vmem:[%s4183_s1] ss:$16 sps:$4 sm:$0xff]   ;;  %v3240_v46 = vld [vmem:[%s4183_s1 + $0x2c] ss:$16 sps:$4 sm:$0xff]  }
 0x5e2   :  { %3329 = vtanh.f32 %v1863_v47  ;;  %v3235_v47 = vld [vmem:[%s4183_s1 + $0x20] ss:$16 sps:$4 sm:$0xff]   ;;  %v3246_v50 = vld [vmem:[%s4183_s1 + $0x4c] ss:$16 sps:$4 sm:$0xff]  }
 0x5e3   :  { %3331 = vtanh.f32 %v1857_v48  ;;  %v3238_v48 = vld [vmem:[%s4183_s1 + $0x28] ss:$16 sps:$4 sm:$0xff]  }
 0x5e4   :  { %3333 = vtanh.f32 %v1868_v10  ;;  %v3241_v10 = vld [vmem:[%s4183_s1 + $0x40] ss:$16 sps:$4 sm:$0xff]  }
 0x5eb   :  { %v3328_v11 = vpop.eup %3327 }
 0x5ec   :  { %v3330_v12 = vpop.eup %3329  ;;  %v1861_v13 = vmul.f32 0.5, %v3328_v11  ;;  %v3244_v11 = vld [vmem:[%s4183_s1 + $0x48] ss:$16 sps:$4 sm:$0xff]  }
 0x5ed   :  { %v1865_v14 = vmul.f32 0.5, %v3330_v12  ;;  %v3332_v16 = vpop.eup %3331  ;;  %v3249_v12 = vld [vmem:[%s4183_s1 + $0x64] ss:$16 sps:$4 sm:$0xff]  }
 0x5ee   :  { %v1862_v15 = vadd.f32 0.5, %v1861_v13  ;;  %v3334_v21 = vpop.eup %3333  ;;  %v3252_v13 = vld [vmem:[%s4183_s1 + $0x6c] ss:$16 sps:$4 sm:$0xff]  }
 0x5ef   :  { %v1866_v17 = vadd.f32 0.5, %v1865_v14  ;;  %v1870_v9 = vmul.f32 0.5, %v3334_v21  ;;  %v3247_v14 = vld [vmem:[%s4183_s1 + $0x60] ss:$16 sps:$4 sm:$0xff]   ;;  %v3264_v21 = vld [vmem:[%s4183_s1 + $0xac] ss:$16 sps:$4 sm:$0xff]  }
 0x5f0   :  { %v1873_v18 = vmul.f32 %v3332_v16, %v1862_v15  ;;  %v3250_v15 = vld [vmem:[%s4183_s1 + $0x68] ss:$16 sps:$4 sm:$0xff]   ;;  %v3255_v16 = vld [vmem:[%s4183_s1 + $0x84] ss:$16 sps:$4 sm:$0xff]  }
 0x5f1   :  { %v1872_v19 = vmul.f32 %v1866_v17, %v3968_v33  ;;  %v1871_v22 = vadd.f32 0.5, %v1870_v9  ;;  %v3258_v17 = vld [vmem:[%s4183_s1 + $0x8c] ss:$16 sps:$4 sm:$0xff]   ;;  %v3259_v9 = vld [vmem:[%s4183_s1 + $0xa0] ss:$16 sps:$4 sm:$0xff]  }
 0x5f3   :  { %v4015_v20 = vadd.f32 %v1873_v18, %v1872_v19  ;;  %v3253_v18 = vld [vmem:[%s4183_s1 + $0x80] ss:$16 sps:$4 sm:$0xff]   ;;  %v3256_v19 = vld [vmem:[%s4183_s1 + $0x88] ss:$16 sps:$4 sm:$0xff]  }
 0x5f5   :  { %3335 = vtanh.f32 %v4015_v20 }
 0x5ff   :  { %v3336_v23 = vpop.eup %3335 }
 0x600   :  { %v1876_v24 = vmul.f32 %v3336_v23, %v1871_v22  ;;  %v3262_v22 = vld [vmem:[%s4183_s1 + $0xa8] ss:$16 sps:$4 sm:$0xff]   ;;  %v3267_v23 = vld [vmem:[%s4183_s1 + $0xc4] ss:$16 sps:$4 sm:$0xff]  }
 0x602   :  { %v1879_v25 = vpack.c.bf16 %v1876_v24, %v1876_v24  ;;  %v3270_v24 = vld [vmem:[%s4183_s1 + $0xcc] ss:$16 sps:$4 sm:$0xff]  }
 0x604   :  { %3025 = vst [vmem:[%s4185_s2 + $0x14] sm:$0xf] %v1879_v25  ;;  %2117 = vmatmul.mubr.bf16.vlgmr.msra.gmra.mrb[24].mxu0 %v1879_v25  ;;  %2158 = vmatmul.mubr.bf16.vlgmr.msra.gmra.mrb[24].mxu1 %v1879_v25  ;;  %v3265_v25 = vld [vmem:[%s4183_s1 + $0xc0] ss:$16 sps:$4 sm:$0xff]  }
 0x605   :  { %2396 = vmatpush1.bf16.msra.mxu0 %v3733_v4  ;;  %2437 = vmatpush1.bf16.msra.mxu1 %v3738_v52  ;;  %v3026_v4 = vld [vmem:[%s4184_s0 + $0x60] sm:$0xff] }
 0x606   :  { %2397 = vmatprep.subr.bf16.mxu0 %v3747_v53  ;;  %2438 = vmatprep.subr.bf16.mxu1 %v3752_v54  ;;  %v1887_v52 = vunpack.c.l.bf16 %v3026_v4  ;;  %v3027_v53 = vld [vmem:[%s4184_s0 + $0x68] sm:$0xff]  ;;  %v1888_v54 = vunpack.c.h.bf16 %v3026_v4 }
 0x607   :  { %2427 = vmatprep.mubr.bf16.mxu0 %v3367_v1  ;;  %2468 = vmatprep.mubr.bf16.mxu1 %v3367_v1  ;;  %v3268_v4 = vld [vmem:[%s4183_s1 + $0xc8] ss:$16 sps:$4 sm:$0xff]  }
 0x609   :  { %2398 = vmatpush1.bf16.msra.mxu0 %v3757_v55  ;;  %2439 = vmatpush1.bf16.msra.mxu1 %v3762_v56 }
 0x60a   :  { %2399 = vmatprep.subr.bf16.mxu0 %v3771_v57  ;;  %2440 = vmatprep.subr.bf16.mxu1 %v3776_v58  ;;  %v1889_v58 = vunpack.c.l.bf16 %v3027_v53 }
 0x60d   :  { %2400 = vmatpush1.bf16.msra.mxu0 %v3781_v59  ;;  %2441 = vmatpush1.bf16.msra.mxu1 %v3786_v60 }
 0x60e   :  { %2401 = vmatprep.subr.bf16.mxu0 %v3795_v61  ;;  %2442 = vmatprep.subr.bf16.mxu1 %v3800_v62 }
 0x611   :  { %2402 = vmatpush1.bf16.msra.mxu0 %v3805_v63  ;;  %2443 = vmatpush1.bf16.msra.mxu1 %v3810_v34 }
 0x612   :  { %2403 = vmatprep.subr.bf16.mxu0 %v3819_v35  ;;  %2444 = vmatprep.subr.bf16.mxu1 %v3824_v36 }
 0x615   :  { %2404 = vmatpush1.bf16.msra.mxu0 %v3829_v37  ;;  %2445 = vmatpush1.bf16.msra.mxu1 %v3834_v38 }
 0x616   :  { %2405 = vmatprep.subr.bf16.mxu0 %v3843_v39  ;;  %2446 = vmatprep.subr.bf16.mxu1 %v3848_v40  ;;  %v1890_v39 = vunpack.c.h.bf16 %v3027_v53  ;;  %v3276_v53 = vld [vmem:[%s4183_s1 + $0xec] ss:$16 sps:$4 sm:$0xff]  }
 0x619   :  { %2406 = vmatpush1.bf16.msra.mxu0 %v3853_v41  ;;  %2447 = vmatpush1.bf16.msra.mxu1 %v3858_v42 }
 0x61a   :  { %2407 = vmatprep.subr.bf16.mxu0 %v3867_v43  ;;  %2448 = vmatprep.subr.bf16.mxu1 %v3872_v44 }
 0x61d   :  { %2408 = vmatpush1.bf16.msra.mxu0 %v3877_v2  ;;  %2449 = vmatpush1.bf16.msra.mxu1 %v3882_v3 }
 0x61e   :  { %2409 = vmatprep.subr.bf16.mxu0 %v3891_v5  ;;  %2450 = vmatprep.subr.bf16.mxu1 %v3896_v6 }
 0x621   :  { %2410 = vmatpush1.bf16.msra.mxu0 %v3901_v7  ;;  %2451 = vmatpush1.bf16.msra.mxu1 %v3906_v8 }
 0x622   :  { %2706 = vmatprep.subr.bf16.mxu0 %v3231_v0  ;;  %2747 = vmatprep.subr.bf16.mxu1 %v3234_v32 }
 0x6d7   :  { %v2118_v55 = vpop.f32.mrb[24].mxu0  ;;  %v2159_v56 = vpop.f32.mrb[24].mxu1 }
 0x6d8   :  { %v2166_v57 = vadd.f32 %v2118_v55, %v1887_v52  ;;  %v2120_v59 = vpop.f32.mrb[25].mxu0  ;;  %v2161_v60 = vpop.f32.mrb[25].mxu1  ;;  %v2168_v38 = vadd.f32 %v2159_v56, %v1889_v58  ;;  %v3273_v52 = vld [vmem:[%s4183_s1 + $0xe4] ss:$16 sps:$4 sm:$0xff]   ;;  %v3274_v55 = vld [vmem:[%s4183_s1 + $0xe8] ss:$16 sps:$4 sm:$0xff]  }
 0x6d9   :  { %v2167_v61 = vadd.f32 %v2120_v59, %v1888_v54  ;;  %v2122_v62 = vpop.f32.mrb[26].mxu0  ;;  %v2163_v63 = vpop.f32.mrb[26].mxu1  ;;  %v2169_v40 = vadd.f32 %v2161_v60, %v1890_v39  ;;  %v3271_v54 = vld [vmem:[%s4183_s1 + $0xe0] ss:$16 sps:$4 sm:$0xff]   ;;  %v3062_v58 = vld [vmem:[%s4184_s0 + $0x78] sm:$0xff] }
 0x6da   :  { %v2170_v34 = vmul.f32 0.5, %v2166_v57  ;;  %v2123_v35 = vpop.f32.mrb[27].mxu0  ;;  %v2164_v36 = vpop.f32.mrb[27].mxu1  ;;  %v3061_v56 = vld [vmem:[%s4184_s0 + $0x70] sm:$0xff]  ;;  %v2200_v63 = vunpack.c.l.bf16 %v3062_v58 }
 0x6db   :  { %v2174_v37 = vmul.f32 0.5, %v2167_v61  ;;  %v2179_v41 = vmul.f32 0.5, %v2169_v40  ;;  %v2198_v57 = vunpack.c.l.bf16 %v3061_v56  ;;  %v2199_v59 = vunpack.c.h.bf16 %v3061_v56 }
 0x6dc   :  { %3337 = vtanh.f32 %v2170_v34 }
 0x6dd   :  { %3339 = vtanh.f32 %v2174_v37 }
 0x6de   :  { %3341 = vtanh.f32 %v2168_v38 }
 0x6df   :  { %3343 = vtanh.f32 %v2179_v41 }
 0x6e6   :  { %v3338_v42 = vpop.eup %3337 }
 0x6e7   :  { %v3340_v43 = vpop.eup %3339  ;;  %v2172_v44 = vmul.f32 0.5, %v3338_v42 }
 0x6e8   :  { %v2176_v2 = vmul.f32 0.5, %v3340_v43  ;;  %v3342_v5 = vpop.eup %3341 }
 0x6e9   :  { %v2173_v3 = vadd.f32 0.5, %v2172_v44  ;;  %v3344_v26 = vpop.eup %3343  ;;  %v2201_v44 = vunpack.c.h.bf16 %v3062_v58 }
 0x6ea   :  { %v2177_v6 = vadd.f32 0.5, %v2176_v2  ;;  %v2181_v27 = vmul.f32 0.5, %v3344_v26 }
 0x6eb   :  { %v2184_v7 = vmul.f32 %v3342_v5, %v2173_v3 }
 0x6ec   :  { %v2183_v8 = vmul.f32 %v2177_v6, %v4015_v20  ;;  %v2182_v28 = vadd.f32 0.5, %v2181_v27  ;;  %v3261_v20 = vld [vmem:[%s4183_s1 + $0xa4] ss:$16 sps:$4 sm:$0xff]  }
 0x6ee   :  { %v4060_v33 = vadd.f32 %v2184_v7, %v2183_v8 }
 0x6f0   :  { %3345 = vtanh.f32 %v4060_v33 }
 0x6fa   :  { %v3346_v29 = vpop.eup %3345 }
 0x6fb   :  { %v2187_v30 = vmul.f32 %v3346_v29, %v2182_v28 }
 0x6fd   :  { %v2190_v31 = vpack.c.bf16 %v2187_v30, %v2187_v30 }
 0x6ff   :  { %3060 = vst [vmem:[%s4185_s2 + $0x18] sm:$0xf] %v2190_v31  ;;  %2428 = vmatmul.mubr.bf16.vlgmr.msra.gmra.mrb[28].mxu0 %v2190_v31  ;;  %2469 = vmatmul.mubr.bf16.vlgmr.msra.gmra.mrb[28].mxu1 %v2190_v31 }
 0x700   :  { %2738 = vmatprep.mubr.bf16.mxu0 %v3367_v1  ;;  %2779 = vmatprep.mubr.bf16.mxu1 %v3367_v1  ;;  %v3237_v1 = vld [vmem:[%s4183_s1 + $0x24] ss:$16 sps:$4 sm:$0xff]  }
 0x701   :  { %2707 = vmatpush1.bf16.msra.mxu0 %v3229_v51  ;;  %2748 = vmatpush1.bf16.msra.mxu1 %v3232_v45 }
 0x702   :  { %2708 = vmatprep.subr.bf16.mxu0 %v3237_v1  ;;  %2749 = vmatprep.subr.bf16.mxu1 %v3240_v46 }
 0x705   :  { %2709 = vmatpush1.bf16.msra.mxu0 %v3235_v47  ;;  %2750 = vmatpush1.bf16.msra.mxu1 %v3238_v48  ;;  %v3096_v47 = vld [vmem:[%s4184_s0 + $0x80] sm:$0xff] }
 0x706   :  { %2710 = vmatprep.subr.bf16.mxu0 %v3243_v49  ;;  %2751 = vmatprep.subr.bf16.mxu1 %v3246_v50  ;;  %v2509_v48 = vunpack.c.l.bf16 %v3096_v47  ;;  %v2510_v49 = vunpack.c.h.bf16 %v3096_v47 }
 0x709   :  { %2711 = vmatpush1.bf16.msra.mxu0 %v3241_v10  ;;  %2752 = vmatpush1.bf16.msra.mxu1 %v3244_v11 }
 0x70a   :  { %2712 = vmatprep.subr.bf16.mxu0 %v3249_v12  ;;  %2753 = vmatprep.subr.bf16.mxu1 %v3252_v13 }
 0x70d   :  { %2713 = vmatpush1.bf16.msra.mxu0 %v3247_v14  ;;  %2754 = vmatpush1.bf16.msra.mxu1 %v3250_v15 }
 0x70e   :  { %2714 = vmatprep.subr.bf16.mxu0 %v3255_v16  ;;  %2755 = vmatprep.subr.bf16.mxu1 %v3258_v17 }
 0x711   :  { %2715 = vmatpush1.bf16.msra.mxu0 %v3253_v18  ;;  %2756 = vmatpush1.bf16.msra.mxu1 %v3256_v19 }
 0x712   :  { %2716 = vmatprep.subr.bf16.mxu0 %v3261_v20  ;;  %2757 = vmatprep.subr.bf16.mxu1 %v3264_v21 }
 0x715   :  { %2717 = vmatpush1.bf16.msra.mxu0 %v3259_v9  ;;  %2758 = vmatpush1.bf16.msra.mxu1 %v3262_v22 }
 0x716   :  { %2718 = vmatprep.subr.bf16.mxu0 %v3267_v23  ;;  %2759 = vmatprep.subr.bf16.mxu1 %v3270_v24 }
 0x719   :  { %2719 = vmatpush1.bf16.msra.mxu0 %v3265_v25  ;;  %2760 = vmatpush1.bf16.msra.mxu1 %v3268_v4 }
 0x71a   :  { %2720 = vmatprep.subr.bf16.mxu0 %v3273_v52  ;;  %2761 = vmatprep.subr.bf16.mxu1 %v3276_v53 }
 0x71d   :  { %2721 = vmatpush1.bf16.msra.mxu0 %v3271_v54  ;;  %2762 = vmatpush1.bf16.msra.mxu1 %v3274_v55 }
 0x7d2   :  { %v2429_v60 = vpop.f32.mrb[28].mxu0  ;;  %v2470_v61 = vpop.f32.mrb[28].mxu1 }
 0x7d3   :  { %v2477_v62 = vadd.f32 %v2429_v60, %v2198_v57  ;;  %v2431_v34 = vpop.f32.mrb[29].mxu0  ;;  %v2472_v35 = vpop.f32.mrb[29].mxu1  ;;  %v2479_v43 = vadd.f32 %v2470_v61, %v2200_v63 }
 0x7d4   :  { %v2478_v36 = vadd.f32 %v2431_v34, %v2199_v59  ;;  %v2433_v37 = vpop.f32.mrb[30].mxu0  ;;  %v2474_v38 = vpop.f32.mrb[30].mxu1  ;;  %v2480_v2 = vadd.f32 %v2472_v35, %v2201_v44 }
 0x7d5   :  { %v2481_v39 = vmul.f32 0.5, %v2477_v62  ;;  %v2434_v40 = vpop.f32.mrb[31].mxu0  ;;  %v2475_v41 = vpop.f32.mrb[31].mxu1 }
 0x7d6   :  { %v2485_v42 = vmul.f32 0.5, %v2478_v36  ;;  %v2490_v3 = vmul.f32 0.5, %v2480_v2 }
 0x7d7   :  { %3347 = vtanh.f32 %v2481_v39 }
 0x7d8   :  { %3349 = vtanh.f32 %v2485_v42 }
 0x7d9   :  { %3351 = vtanh.f32 %v2479_v43 }
 0x7da   :  { %3353 = vtanh.f32 %v2490_v3 }
 0x7e1   :  { %v3348_v5 = vpop.eup %3347 }
 0x7e2   :  { %v3350_v6 = vpop.eup %3349  ;;  %v2483_v7 = vmul.f32 0.5, %v3348_v5 }
 0x7e3   :  { %v2487_v8 = vmul.f32 0.5, %v3350_v6  ;;  %v3352_v27 = vpop.eup %3351 }
 0x7e4   :  { %v2484_v26 = vadd.f32 0.5, %v2483_v7  ;;  %v3354_v0 = vpop.eup %3353 }
 0x7e5   :  { %v2488_v28 = vadd.f32 0.5, %v2487_v8  ;;  %v2492_v32 = vmul.f32 0.5, %v3354_v0 }
 0x7e6   :  { %v2495_v29 = vmul.f32 %v3352_v27, %v2484_v26 }
 0x7e7   :  { %v2494_v30 = vmul.f32 %v2488_v28, %v4060_v33  ;;  %v2493_v51 = vadd.f32 0.5, %v2492_v32  ;;  %v3097_v33 = vld [vmem:[%s4184_s0 + $0x88] sm:$0xff] }
 0x7e8   :  { %v2511_v12 = vunpack.c.l.bf16 %v3097_v33  ;;  %v2512_v22 = vunpack.c.h.bf16 %v3097_v33 }
 0x7e9   :  { %v2496_v31 = vadd.f32 %v2495_v29, %v2494_v30 }
 0x7eb   :  { %3355 = vtanh.f32 %v2496_v31 }
 0x7f5   :  { %v3356_v45 = vpop.eup %3355 }
 0x7f6   :  { %v2498_v1 = vmul.f32 %v3356_v45, %v2493_v51 }
 0x7f8   :  { %v2501_v46 = vpack.c.bf16 %v2498_v1, %v2498_v1 }
 0x7fa   :  { %3095 = vst [vmem:[%s4185_s2 + $0x1c] sm:$0xf] %v2501_v46  ;;  %2739 = vmatmul.mubr.bf16.vlgmr.msra.gmra.mrb[32].mxu0 %v2501_v46  ;;  %2780 = vmatmul.mubr.bf16.vlgmr.msra.gmra.mrb[32].mxu1 %v2501_v46 }
 0x8cd   :  { %v2740_v50 = vpop.f32.mrb[32].mxu0  ;;  %v2781_v10 = vpop.f32.mrb[32].mxu1 }
 0x8ce   :  { %v2788_v11 = vadd.f32 %v2740_v50, %v2509_v48  ;;  %v2742_v13 = vpop.f32.mrb[33].mxu0  ;;  %v2783_v14 = vpop.f32.mrb[33].mxu1  ;;  %v2790_v9 = vadd.f32 %v2781_v10, %v2511_v12 }
 0x8cf   :  { %v2789_v15 = vadd.f32 %v2742_v13, %v2510_v49  ;;  %v2744_v16 = vpop.f32.mrb[34].mxu0  ;;  %v2785_v17 = vpop.f32.mrb[34].mxu1  ;;  %v2791_v23 = vadd.f32 %v2783_v14, %v2512_v22 }
 0x8d0   :  { %v2792_v18 = vmul.f32 0.5, %v2788_v11  ;;  %v2745_v19 = vpop.f32.mrb[35].mxu0  ;;  %v2786_v20 = vpop.f32.mrb[35].mxu1 }
 0x8d1   :  { %v2796_v21 = vmul.f32 0.5, %v2789_v15  ;;  %v2801_v24 = vmul.f32 0.5, %v2791_v23 }
 0x8d2   :  { %3357 = vtanh.f32 %v2792_v18 }
 0x8d3   :  { %3359 = vtanh.f32 %v2796_v21 }
 0x8d4   :  { %3361 = vtanh.f32 %v2790_v9 }
 0x8d5   :  { %3363 = vtanh.f32 %v2801_v24 }
 0x8dc   :  { %v3358_v25 = vpop.eup %3357 }
 0x8dd   :  { %v3360_v4 = vpop.eup %3359  ;;  %v2794_v52 = vmul.f32 0.5, %v3358_v25 }
 0x8de   :  { %v2798_v53 = vmul.f32 0.5, %v3360_v4  ;;  %v3362_v55 = vpop.eup %3361 }
 0x8df   :  { %v2795_v54 = vadd.f32 0.5, %v2794_v52  ;;  %v3364_v60 = vpop.eup %3363 }
 0x8e0   :  { %v2799_v56 = vadd.f32 0.5, %v2798_v53  ;;  %v2803_v61 = vmul.f32 0.5, %v3364_v60 }
 0x8e1   :  { %v2806_v57 = vmul.f32 %v3362_v55, %v2795_v54 }
 0x8e2   :  { %v2805_v58 = vmul.f32 %v2799_v56, %v2496_v31  ;;  %v2804_v62 = vadd.f32 0.5, %v2803_v61 }
 0x8e4   :  { %v2807_v59 = vadd.f32 %v2806_v57, %v2805_v58 }
 0x8e6   :  { %3365 = vtanh.f32 %v2807_v59 }
 0x8f0   :  { %v3366_v63 = vpop.eup %3365 }
 0x8f1   :  { %v2809_v34 = vmul.f32 %v3366_v63, %v2804_v62 }
 0x8f3   :  { %v2812_v35 = vpack.c.bf16 %v2809_v34, %v2809_v34 }
 0x8f5   :  { %3130 = vst [vmem:[%s4185_s2 + $0x20] sm:$0xf] %v2812_v35 }

</bundles_post_ra>
